<compile_context>
chip_gen: v6e
topology: v6e:2x2x1
jax: 0.10.0
libtpu: 0.0.40
codegen_flags: <defaults>
</compile_context>

<pallas_src>
import functools

import numpy as np
import jax
import jax.numpy as jnp
from jax import lax
from jax.experimental import pallas as pl
from jax.experimental.pallas import tpu as pltpu

CLAMP_MAX = 88.722835
EPS = float(np.finfo(np.float32).eps)


def _dynpool_kernel(w_sref, x_ref, o_ref, exw_ref, hh_ref, *, ksize, pad, cblk):
    """One grid step: a (cblk, H, W) slab of one batch element.

    w_sref : SMEM (C*k,) f32   normalized per-channel 1-D Gaussian taps (scalar prefetch)
    x_ref  : VMEM (cblk, H, W) input slab
    o_ref  : VMEM (cblk, H, W) output slab
    exw_ref: VMEM (H, W+2p)    exp(x) with zero halo columns (horizontal-pass input)
    hh_ref : VMEM (H+2p, W)    horizontal-pass result with zero halo rows
    """
    k, p = ksize, pad
    _, H, W = o_ref.shape

    # Zero the halo scratch once per grid step; only the interiors are rewritten below,
    # so the halo regions stay exactly 0 (== exp() of the old -1e30 padding).
    exw_ref[...] = jnp.zeros_like(exw_ref)
    hh_ref[...] = jnp.zeros_like(hh_ref)

    c0 = pl.program_id(1) * cblk  # first global channel of this block

    for ci in range(cblk):
        wbase = (c0 + ci) * k

        # exp(clamp(x)) for this channel, written inside the W-padded buffer.
        exw_ref[:, p:p + W] = jnp.exp(
            jnp.minimum(x_ref[ci].astype(jnp.float32), CLAMP_MAX))
        exw = exw_ref[...]

        # Horizontal k-tap pass (scalar weight from SMEM -> scalar-broadcast FMA).
        h = jnp.zeros((H, W), jnp.float32)
        for t in range(k):
            h = h + w_sref[wbase + t] * exw[:, t:t + W]
        hh_ref[p:p + H, :] = h
        hv = hh_ref[...]

        # Vertical k-tap pass.
        acc = jnp.zeros((H, W), jnp.float32)
        for t in range(k):
            acc = acc + w_sref[wbase + t] * hv[t:t + H, :]

        o_ref[ci] = jnp.log(acc + EPS).astype(o_ref.dtype)


def dynamic_pooling(x, sigma, kernel_size):
    """Pallas implementation of DynamicPooling.forward.

    x:     (B, C, H, W)
    sigma: (C,) learnable per-channel bandwidth
    """
    B, C, H, W = x.shape
    k = int(kernel_size)
    assert k % 2 == 1
    p = k // 2

    # Separable weights: K_c = g_c g_c^T / (sum g_c)^2 with
    # g_c[t] = exp(-(t^2/2) / (sigma_c^2 + eps))  -- exactly the PyTorch 2-D kernel.
    r = jnp.arange(-p, p + 1, dtype=jnp.float32)
    g = jnp.exp(-(r[None, :] ** 2) / 2.0 /
                (sigma.astype(jnp.float32)[:, None] ** 2 + EPS))      # (C, k)
    w1d = g / jnp.sum(g, axis=1, keepdims=True)                       # (C, k)
    w1d_flat = w1d.reshape(C * k)   # 1-D layout -> compact SMEM footprint (no 2-D pad)

    # Channel blocking: largest divisor of C whose input slab stays within a modest VMEM
    # budget (double-buffered in + out + scratch), capped to bound in-kernel unrolling.
    # (H, W) stay un-tiled; very large planes would additionally need row tiling w/ halo.
    budget_elems = (2 * 1024 * 1024) // 4            # ~2 MiB of f32 per input slab
    max_cblk = max(1, min(16, budget_elems // max(1, H * W)))
    cblk = 1
    for d in range(1, C + 1):
        if C % d == 0 and d <= max_cblk:
            cblk = d
    n_cblk = C // cblk

    # Explicit scoped-VMEM limit: above v5e's 16 MiB default, well under v7x's 64 MiB.
    block_bytes = cblk * H * W * x.dtype.itemsize
    scratch_bytes = (H * (W + 2 * p) + (H + 2 * p) * W) * 4
    vmem_limit = int(min(48 * 1024 * 1024,
                         max(16 * 1024 * 1024, 6 * block_bytes + 4 * scratch_bytes)))

    kernel_fn = functools.partial(_dynpool_kernel, ksize=k, pad=p, cblk=cblk)

    out = pl.pallas_call(
        kernel_fn,
        out_shape=jax.ShapeDtypeStruct((B, C, H, W), x.dtype),
        grid_spec=pltpu.PrefetchScalarGridSpec(
            num_scalar_prefetch=1,                     # w1d_flat -> SMEM, no per-step DMA
            grid=(B, n_cblk),
            in_specs=[
                pl.BlockSpec((None, cblk, H, W), lambda b, cb, w: (b, cb, 0, 0)),
            ],
            out_specs=pl.BlockSpec((None, cblk, H, W), lambda b, cb, w: (b, cb, 0, 0)),
            scratch_shapes=[
                pltpu.VMEM((H, W + 2 * p), jnp.float32),
                pltpu.VMEM((H + 2 * p, W), jnp.float32),
            ],
        ),
        compiler_params=pltpu.CompilerParams(
            dimension_semantics=("parallel", "parallel"),
            vmem_limit_bytes=vmem_limit),
    )(w1d_flat, x)
    return out


def dynamic_pooling_ref(x, sigma, kernel_size):
    """Pure-JAX reference mirroring the PyTorch forward (full 2-D depthwise conv)."""
    C = x.shape[1]
    k = kernel_size
    p = k // 2
    r = jnp.arange(-p, p + 1, dtype=jnp.float32)
    dissq = r[None, :] ** 2 + r[:, None] ** 2
    kern = jnp.exp(-(dissq / 2.0)[None] / (sigma[:, None, None] ** 2 + EPS))
    kern = kern / jnp.sum(kern, axis=(1, 2), keepdims=True)          # (C, k, k)
    kern = kern.reshape(C, 1, k, k)                                   # OIHW, depthwise
    expx = jnp.exp(jnp.minimum(x, CLAMP_MAX))
    gp = lax.conv_general_dilated(
        expx, kern,
        window_strides=(1, 1),
        padding=((p, p), (p, p)),
        dimension_numbers=("NCHW", "OIHW", "NCHW"),
        feature_group_count=C,
    )
    return jnp.log(gp + EPS)


if __name__ == "__main__":
    B, C, H, W = 2, 4, 16, 16
    kernel_size = 5

    key = jax.random.PRNGKey(0)
    x = jax.random.normal(key, (B, C, H, W), dtype=jnp.float32)
    # nn.Parameter init: sigma filled with kernel_size / 2 / 2
    sigma = jnp.full((C,), kernel_size / 2.0 / 2.0, dtype=jnp.float32)

    out = dynamic_pooling(x, sigma, kernel_size)
    out = jax.block_until_ready(out)

    ref = dynamic_pooling_ref(x, sigma, kernel_size)
    np.testing.assert_allclose(np.asarray(out), np.asarray(ref), rtol=2e-5, atol=2e-5)

    print("KERNEL_OK")
</pallas_src>

<mosaic_0001>
module attributes {stable_mosaic.version = 11 : i64} {
  func.func @_dynpool_kernel(%arg0: i32, %arg1: i32, %arg2: memref<20xf32, #tpu.memory_space<smem>>, %arg3: memref<1x4x16x16xf32, #tpu.memory_space<vmem>>, %arg4: memref<1x4x16x16xf32, #tpu.memory_space<vmem>>, %arg5: memref<16x20xf32, #tpu.memory_space<vmem>>, %arg6: memref<20x16xf32, #tpu.memory_space<vmem>>) attributes {dimension_semantics = [#tpu.dimension_semantics<parallel>, #tpu.dimension_semantics<parallel>], iteration_bounds = array<i64: 2, 1>, scalar_prefetch = 1 : i64, scratch_operands = 2 : i64, tpu.core_type = #tpu.core_type<tc>, window_params = [{transform_indices = @transform_0, window_bounds = array<i64: 1, 4, 16, 16>}, {transform_indices = @transform_1, window_bounds = array<i64: 1, 4, 16, 16>}]} {
    %cst = arith.constant 0.000000e+00 : f32
    %0 = vector.broadcast %cst : f32 to vector<16x20xf32>
    %c0 = arith.constant 0 : index
    %c0_0 = arith.constant 0 : index
    %1 = vector.load %arg5[%c0, %c0_0] : memref<16x20xf32, #tpu.memory_space<vmem>>, vector<16x20xf32>
    tpu.vector_store %arg5[%c0, %c0_0], %0 {strides = array<i32>} : memref<16x20xf32, #tpu.memory_space<vmem>>, vector<16x20xf32>,
    %cst_1 = arith.constant 0.000000e+00 : f32
    %2 = vector.broadcast %cst_1 : f32 to vector<20x16xf32>
    %c0_2 = arith.constant 0 : index
    %c0_3 = arith.constant 0 : index
    %3 = vector.load %arg6[%c0_2, %c0_3] : memref<20x16xf32, #tpu.memory_space<vmem>>, vector<20x16xf32>
    tpu.vector_store %arg6[%c0_2, %c0_3], %2 {strides = array<i32>} : memref<20x16xf32, #tpu.memory_space<vmem>>, vector<20x16xf32>,
    %c4_i32 = arith.constant 4 : i32
    %4 = arith.muli %arg1, %c4_i32 : i32
    %c0_i32 = arith.constant 0 : i32
    %5 = arith.addi %4, %c0_i32 : i32
    %c5_i32 = arith.constant 5 : i32
    %6 = arith.muli %5, %c5_i32 : i32
    %c0_4 = arith.constant 0 : index
    %c0_5 = arith.constant 0 : index
    %c0_6 = arith.constant 0 : index
    %c0_7 = arith.constant 0 : index
    %7 = vector.load %arg3[%c0_4, %c0_5, %c0_6, %c0_7] : memref<1x4x16x16xf32, #tpu.memory_space<vmem>>, vector<1x1x16x16xf32>
    %8 = vector.shape_cast %7 : vector<1x1x16x16xf32> to vector<16x16xf32>
    %cst_8 = arith.constant 88.7228317 : f32
    %9 = vector.broadcast %cst_8 : f32 to vector<16x16xf32>
    %10 = arith.minimumf %8, %9 : vector<16x16xf32>
    %11 = math.exp %10 : vector<16x16xf32>
    %c0_9 = arith.constant 0 : index
    %c2 = arith.constant 2 : index
    %12 = vector.load %arg5[%c0_9, %c2] : memref<16x20xf32, #tpu.memory_space<vmem>>, vector<16x16xf32>
    tpu.vector_store %arg5[%c0_9, %c2], %11 {strides = array<i32>} : memref<16x20xf32, #tpu.memory_space<vmem>>, vector<16x16xf32>,
    %c0_10 = arith.constant 0 : index
    %c0_11 = arith.constant 0 : index
    %13 = vector.load %arg5[%c0_10, %c0_11] : memref<16x20xf32, #tpu.memory_space<vmem>>, vector<16x20xf32>
    %cst_12 = arith.constant 0.000000e+00 : f32
    %14 = vector.broadcast %cst_12 : f32 to vector<16x16xf32>
    %c0_i32_13 = arith.constant 0 : i32
    %15 = arith.addi %6, %c0_i32_13 : i32
    %16 = arith.index_cast %15 : i32 to index
    %17 = memref.load %arg2[%16] : memref<20xf32, #tpu.memory_space<smem>>
    %18 = vector.extract_strided_slice %13 {offsets = [0, 0], sizes = [16, 16], strides = [1, 1]} : vector<16x20xf32> to vector<16x16xf32>
    %19 = vector.broadcast %17 : f32 to vector<16x16xf32>
    %20 = arith.mulf %19, %18 : vector<16x16xf32>
    %21 = arith.addf %14, %20 : vector<16x16xf32>
    %c1_i32 = arith.constant 1 : i32
    %22 = arith.addi %6, %c1_i32 : i32
    %23 = arith.index_cast %22 : i32 to index
    %24 = memref.load %arg2[%23] : memref<20xf32, #tpu.memory_space<smem>>
    %25 = vector.extract_strided_slice %13 {offsets = [0, 1], sizes = [16, 16], strides = [1, 1]} : vector<16x20xf32> to vector<16x16xf32>
    %26 = vector.broadcast %24 : f32 to vector<16x16xf32>
    %27 = arith.mulf %26, %25 : vector<16x16xf32>
    %28 = arith.addf %21, %27 : vector<16x16xf32>
    %c2_i32 = arith.constant 2 : i32
    %29 = arith.addi %6, %c2_i32 : i32
    %30 = arith.index_cast %29 : i32 to index
    %31 = memref.load %arg2[%30] : memref<20xf32, #tpu.memory_space<smem>>
    %32 = vector.extract_strided_slice %13 {offsets = [0, 2], sizes = [16, 16], strides = [1, 1]} : vector<16x20xf32> to vector<16x16xf32>
    %33 = vector.broadcast %31 : f32 to vector<16x16xf32>
    %34 = arith.mulf %33, %32 : vector<16x16xf32>
    %35 = arith.addf %28, %34 : vector<16x16xf32>
    %c3_i32 = arith.constant 3 : i32
    %36 = arith.addi %6, %c3_i32 : i32
    %37 = arith.index_cast %36 : i32 to index
    %38 = memref.load %arg2[%37] : memref<20xf32, #tpu.memory_space<smem>>
    %39 = vector.extract_strided_slice %13 {offsets = [0, 3], sizes = [16, 16], strides = [1, 1]} : vector<16x20xf32> to vector<16x16xf32>
    %40 = vector.broadcast %38 : f32 to vector<16x16xf32>
    %41 = arith.mulf %40, %39 : vector<16x16xf32>
    %42 = arith.addf %35, %41 : vector<16x16xf32>
    %c4_i32_14 = arith.constant 4 : i32
    %43 = arith.addi %6, %c4_i32_14 : i32
    %44 = arith.index_cast %43 : i32 to index
    %45 = memref.load %arg2[%44] : memref<20xf32, #tpu.memory_space<smem>>
    %46 = vector.extract_strided_slice %13 {offsets = [0, 4], sizes = [16, 16], strides = [1, 1]} : vector<16x20xf32> to vector<16x16xf32>
    %47 = vector.broadcast %45 : f32 to vector<16x16xf32>
    %48 = arith.mulf %47, %46 : vector<16x16xf32>
    %49 = arith.addf %42, %48 : vector<16x16xf32>
    %c2_15 = arith.constant 2 : index
    %c0_16 = arith.constant 0 : index
    %50 = vector.load %arg6[%c2_15, %c0_16] : memref<20x16xf32, #tpu.memory_space<vmem>>, vector<16x16xf32>
    tpu.vector_store %arg6[%c2_15, %c0_16], %49 {strides = array<i32>} : memref<20x16xf32, #tpu.memory_space<vmem>>, vector<16x16xf32>,
    %c0_17 = arith.constant 0 : index
    %c0_18 = arith.constant 0 : index
    %51 = vector.load %arg6[%c0_17, %c0_18] : memref<20x16xf32, #tpu.memory_space<vmem>>, vector<20x16xf32>
    %cst_19 = arith.constant 0.000000e+00 : f32
    %52 = vector.broadcast %cst_19 : f32 to vector<16x16xf32>
    %c0_i32_20 = arith.constant 0 : i32
    %53 = arith.addi %6, %c0_i32_20 : i32
    %54 = arith.index_cast %53 : i32 to index
    %55 = memref.load %arg2[%54] : memref<20xf32, #tpu.memory_space<smem>>
    %56 = vector.extract_strided_slice %51 {offsets = [0, 0], sizes = [16, 16], strides = [1, 1]} : vector<20x16xf32> to vector<16x16xf32>
    %57 = vector.broadcast %55 : f32 to vector<16x16xf32>
    %58 = arith.mulf %57, %56 : vector<16x16xf32>
    %59 = arith.addf %52, %58 : vector<16x16xf32>
    %c1_i32_21 = arith.constant 1 : i32
    %60 = arith.addi %6, %c1_i32_21 : i32
    %61 = arith.index_cast %60 : i32 to index
    %62 = memref.load %arg2[%61] : memref<20xf32, #tpu.memory_space<smem>>
    %63 = vector.extract_strided_slice %51 {offsets = [1, 0], sizes = [16, 16], strides = [1, 1]} : vector<20x16xf32> to vector<16x16xf32>
    %64 = vector.broadcast %62 : f32 to vector<16x16xf32>
    %65 = arith.mulf %64, %63 : vector<16x16xf32>
    %66 = arith.addf %59, %65 : vector<16x16xf32>
    %c2_i32_22 = arith.constant 2 : i32
    %67 = arith.addi %6, %c2_i32_22 : i32
    %68 = arith.index_cast %67 : i32 to index
    %69 = memref.load %arg2[%68] : memref<20xf32, #tpu.memory_space<smem>>
    %70 = vector.extract_strided_slice %51 {offsets = [2, 0], sizes = [16, 16], strides = [1, 1]} : vector<20x16xf32> to vector<16x16xf32>
    %71 = vector.broadcast %69 : f32 to vector<16x16xf32>
    %72 = arith.mulf %71, %70 : vector<16x16xf32>
    %73 = arith.addf %66, %72 : vector<16x16xf32>
    %c3_i32_23 = arith.constant 3 : i32
    %74 = arith.addi %6, %c3_i32_23 : i32
    %75 = arith.index_cast %74 : i32 to index
    %76 = memref.load %arg2[%75] : memref<20xf32, #tpu.memory_space<smem>>
    %77 = vector.extract_strided_slice %51 {offsets = [3, 0], sizes = [16, 16], strides = [1, 1]} : vector<20x16xf32> to vector<16x16xf32>
    %78 = vector.broadcast %76 : f32 to vector<16x16xf32>
    %79 = arith.mulf %78, %77 : vector<16x16xf32>
    %80 = arith.addf %73, %79 : vector<16x16xf32>
    %c4_i32_24 = arith.constant 4 : i32
    %81 = arith.addi %6, %c4_i32_24 : i32
    %82 = arith.index_cast %81 : i32 to index
    %83 = memref.load %arg2[%82] : memref<20xf32, #tpu.memory_space<smem>>
    %84 = vector.extract_strided_slice %51 {offsets = [4, 0], sizes = [16, 16], strides = [1, 1]} : vector<20x16xf32> to vector<16x16xf32>
    %85 = vector.broadcast %83 : f32 to vector<16x16xf32>
    %86 = arith.mulf %85, %84 : vector<16x16xf32>
    %87 = arith.addf %80, %86 : vector<16x16xf32>
    %cst_25 = arith.constant 1.1920929E-7 : f32
    %88 = vector.broadcast %cst_25 : f32 to vector<16x16xf32>
    %89 = arith.addf %87, %88 : vector<16x16xf32>
    %90 = math.log %89 : vector<16x16xf32>
    %c0_26 = arith.constant 0 : index
    %c0_27 = arith.constant 0 : index
    %c0_28 = arith.constant 0 : index
    %c0_29 = arith.constant 0 : index
    %91 = vector.load %arg4[%c0_26, %c0_27, %c0_28, %c0_29] : memref<1x4x16x16xf32, #tpu.memory_space<vmem>>, vector<1x1x16x16xf32>
    %92 = vector.shape_cast %91 : vector<1x1x16x16xf32> to vector<16x16xf32>
    %93 = vector.shape_cast %90 : vector<16x16xf32> to vector<1x1x16x16xf32>
    tpu.vector_store %arg4[%c0_26, %c0_27, %c0_28, %c0_29], %93 {strides = array<i32>} : memref<1x4x16x16xf32, #tpu.memory_space<vmem>>, vector<1x1x16x16xf32>,
    %c1_i32_30 = arith.constant 1 : i32
    %94 = arith.addi %4, %c1_i32_30 : i32
    %c5_i32_31 = arith.constant 5 : i32
    %95 = arith.muli %94, %c5_i32_31 : i32
    %c0_32 = arith.constant 0 : index
    %c1 = arith.constant 1 : index
    %c0_33 = arith.constant 0 : index
    %c0_34 = arith.constant 0 : index
    %96 = vector.load %arg3[%c0_32, %c1, %c0_33, %c0_34] : memref<1x4x16x16xf32, #tpu.memory_space<vmem>>, vector<1x1x16x16xf32>
    %97 = vector.shape_cast %96 : vector<1x1x16x16xf32> to vector<16x16xf32>
    %cst_35 = arith.constant 88.7228317 : f32
    %98 = vector.broadcast %cst_35 : f32 to vector<16x16xf32>
    %99 = arith.minimumf %97, %98 : vector<16x16xf32>
    %100 = math.exp %99 : vector<16x16xf32>
    %c0_36 = arith.constant 0 : index
    %c2_37 = arith.constant 2 : index
    %101 = vector.load %arg5[%c0_36, %c2_37] : memref<16x20xf32, #tpu.memory_space<vmem>>, vector<16x16xf32>
    tpu.vector_store %arg5[%c0_36, %c2_37], %100 {strides = array<i32>} : memref<16x20xf32, #tpu.memory_space<vmem>>, vector<16x16xf32>,
    %c0_38 = arith.constant 0 : index
    %c0_39 = arith.constant 0 : index
    %102 = vector.load %arg5[%c0_38, %c0_39] : memref<16x20xf32, #tpu.memory_space<vmem>>, vector<16x20xf32>
    %cst_40 = arith.constant 0.000000e+00 : f32
    %103 = vector.broadcast %cst_40 : f32 to vector<16x16xf32>
    %c0_i32_41 = arith.constant 0 : i32
    %104 = arith.addi %95, %c0_i32_41 : i32
    %105 = arith.index_cast %104 : i32 to index
    %106 = memref.load %arg2[%105] : memref<20xf32, #tpu.memory_space<smem>>
    %107 = vector.extract_strided_slice %102 {offsets = [0, 0], sizes = [16, 16], strides = [1, 1]} : vector<16x20xf32> to vector<16x16xf32>
    %108 = vector.broadcast %106 : f32 to vector<16x16xf32>
    %109 = arith.mulf %108, %107 : vector<16x16xf32>
    %110 = arith.addf %103, %109 : vector<16x16xf32>
    %c1_i32_42 = arith.constant 1 : i32
    %111 = arith.addi %95, %c1_i32_42 : i32
    %112 = arith.index_cast %111 : i32 to index
    %113 = memref.load %arg2[%112] : memref<20xf32, #tpu.memory_space<smem>>
    %114 = vector.extract_strided_slice %102 {offsets = [0, 1], sizes = [16, 16], strides = [1, 1]} : vector<16x20xf32> to vector<16x16xf32>
    %115 = vector.broadcast %113 : f32 to vector<16x16xf32>
    %116 = arith.mulf %115, %114 : vector<16x16xf32>
    %117 = arith.addf %110, %116 : vector<16x16xf32>
    %c2_i32_43 = arith.constant 2 : i32
    %118 = arith.addi %95, %c2_i32_43 : i32
    %119 = arith.index_cast %118 : i32 to index
    %120 = memref.load %arg2[%119] : memref<20xf32, #tpu.memory_space<smem>>
    %121 = vector.extract_strided_slice %102 {offsets = [0, 2], sizes = [16, 16], strides = [1, 1]} : vector<16x20xf32> to vector<16x16xf32>
    %122 = vector.broadcast %120 : f32 to vector<16x16xf32>
    %123 = arith.mulf %122, %121 : vector<16x16xf32>
    %124 = arith.addf %117, %123 : vector<16x16xf32>
    %c3_i32_44 = arith.constant 3 : i32
    %125 = arith.addi %95, %c3_i32_44 : i32
    %126 = arith.index_cast %125 : i32 to index
    %127 = memref.load %arg2[%126] : memref<20xf32, #tpu.memory_space<smem>>
    %128 = vector.extract_strided_slice %102 {offsets = [0, 3], sizes = [16, 16], strides = [1, 1]} : vector<16x20xf32> to vector<16x16xf32>
    %129 = vector.broadcast %127 : f32 to vector<16x16xf32>
    %130 = arith.mulf %129, %128 : vector<16x16xf32>
    %131 = arith.addf %124, %130 : vector<16x16xf32>
    %c4_i32_45 = arith.constant 4 : i32
    %132 = arith.addi %95, %c4_i32_45 : i32
    %133 = arith.index_cast %132 : i32 to index
    %134 = memref.load %arg2[%133] : memref<20xf32, #tpu.memory_space<smem>>
    %135 = vector.extract_strided_slice %102 {offsets = [0, 4], sizes = [16, 16], strides = [1, 1]} : vector<16x20xf32> to vector<16x16xf32>
    %136 = vector.broadcast %134 : f32 to vector<16x16xf32>
    %137 = arith.mulf %136, %135 : vector<16x16xf32>
    %138 = arith.addf %131, %137 : vector<16x16xf32>
    %c2_46 = arith.constant 2 : index
    %c0_47 = arith.constant 0 : index
    %139 = vector.load %arg6[%c2_46, %c0_47] : memref<20x16xf32, #tpu.memory_space<vmem>>, vector<16x16xf32>
    tpu.vector_store %arg6[%c2_46, %c0_47], %138 {strides = array<i32>} : memref<20x16xf32, #tpu.memory_space<vmem>>, vector<16x16xf32>,
    %c0_48 = arith.constant 0 : index
    %c0_49 = arith.constant 0 : index
    %140 = vector.load %arg6[%c0_48, %c0_49] : memref<20x16xf32, #tpu.memory_space<vmem>>, vector<20x16xf32>
    %cst_50 = arith.constant 0.000000e+00 : f32
    %141 = vector.broadcast %cst_50 : f32 to vector<16x16xf32>
    %c0_i32_51 = arith.constant 0 : i32
    %142 = arith.addi %95, %c0_i32_51 : i32
    %143 = arith.index_cast %142 : i32 to index
    %144 = memref.load %arg2[%143] : memref<20xf32, #tpu.memory_space<smem>>
    %145 = vector.extract_strided_slice %140 {offsets = [0, 0], sizes = [16, 16], strides = [1, 1]} : vector<20x16xf32> to vector<16x16xf32>
    %146 = vector.broadcast %144 : f32 to vector<16x16xf32>
    %147 = arith.mulf %146, %145 : vector<16x16xf32>
    %148 = arith.addf %141, %147 : vector<16x16xf32>
    %c1_i32_52 = arith.constant 1 : i32
    %149 = arith.addi %95, %c1_i32_52 : i32
    %150 = arith.index_cast %149 : i32 to index
    %151 = memref.load %arg2[%150] : memref<20xf32, #tpu.memory_space<smem>>
    %152 = vector.extract_strided_slice %140 {offsets = [1, 0], sizes = [16, 16], strides = [1, 1]} : vector<20x16xf32> to vector<16x16xf32>
    %153 = vector.broadcast %151 : f32 to vector<16x16xf32>
    %154 = arith.mulf %153, %152 : vector<16x16xf32>
    %155 = arith.addf %148, %154 : vector<16x16xf32>
    %c2_i32_53 = arith.constant 2 : i32
    %156 = arith.addi %95, %c2_i32_53 : i32
    %157 = arith.index_cast %156 : i32 to index
    %158 = memref.load %arg2[%157] : memref<20xf32, #tpu.memory_space<smem>>
    %159 = vector.extract_strided_slice %140 {offsets = [2, 0], sizes = [16, 16], strides = [1, 1]} : vector<20x16xf32> to vector<16x16xf32>
    %160 = vector.broadcast %158 : f32 to vector<16x16xf32>
    %161 = arith.mulf %160, %159 : vector<16x16xf32>
    %162 = arith.addf %155, %161 : vector<16x16xf32>
    %c3_i32_54 = arith.constant 3 : i32
    %163 = arith.addi %95, %c3_i32_54 : i32
    %164 = arith.index_cast %163 : i32 to index
    %165 = memref.load %arg2[%164] : memref<20xf32, #tpu.memory_space<smem>>
    %166 = vector.extract_strided_slice %140 {offsets = [3, 0], sizes = [16, 16], strides = [1, 1]} : vector<20x16xf32> to vector<16x16xf32>
    %167 = vector.broadcast %165 : f32 to vector<16x16xf32>
    %168 = arith.mulf %167, %166 : vector<16x16xf32>
    %169 = arith.addf %162, %168 : vector<16x16xf32>
    %c4_i32_55 = arith.constant 4 : i32
    %170 = arith.addi %95, %c4_i32_55 : i32
    %171 = arith.index_cast %170 : i32 to index
    %172 = memref.load %arg2[%171] : memref<20xf32, #tpu.memory_space<smem>>
    %173 = vector.extract_strided_slice %140 {offsets = [4, 0], sizes = [16, 16], strides = [1, 1]} : vector<20x16xf32> to vector<16x16xf32>
    %174 = vector.broadcast %172 : f32 to vector<16x16xf32>
    %175 = arith.mulf %174, %173 : vector<16x16xf32>
    %176 = arith.addf %169, %175 : vector<16x16xf32>
    %cst_56 = arith.constant 1.1920929E-7 : f32
    %177 = vector.broadcast %cst_56 : f32 to vector<16x16xf32>
    %178 = arith.addf %176, %177 : vector<16x16xf32>
    %179 = math.log %178 : vector<16x16xf32>
    %c0_57 = arith.constant 0 : index
    %c1_58 = arith.constant 1 : index
    %c0_59 = arith.constant 0 : index
    %c0_60 = arith.constant 0 : index
    %180 = vector.load %arg4[%c0_57, %c1_58, %c0_59, %c0_60] : memref<1x4x16x16xf32, #tpu.memory_space<vmem>>, vector<1x1x16x16xf32>
    %181 = vector.shape_cast %180 : vector<1x1x16x16xf32> to vector<16x16xf32>
    %182 = vector.shape_cast %179 : vector<16x16xf32> to vector<1x1x16x16xf32>
    tpu.vector_store %arg4[%c0_57, %c1_58, %c0_59, %c0_60], %182 {strides = array<i32>} : memref<1x4x16x16xf32, #tpu.memory_space<vmem>>, vector<1x1x16x16xf32>,
    %c2_i32_61 = arith.constant 2 : i32
    %183 = arith.addi %4, %c2_i32_61 : i32
    %c5_i32_62 = arith.constant 5 : i32
    %184 = arith.muli %183, %c5_i32_62 : i32
    %c0_63 = arith.constant 0 : index
    %c2_64 = arith.constant 2 : index
    %c0_65 = arith.constant 0 : index
    %c0_66 = arith.constant 0 : index
    %185 = vector.load %arg3[%c0_63, %c2_64, %c0_65, %c0_66] : memref<1x4x16x16xf32, #tpu.memory_space<vmem>>, vector<1x1x16x16xf32>
    %186 = vector.shape_cast %185 : vector<1x1x16x16xf32> to vector<16x16xf32>
    %cst_67 = arith.constant 88.7228317 : f32
    %187 = vector.broadcast %cst_67 : f32 to vector<16x16xf32>
    %188 = arith.minimumf %186, %187 : vector<16x16xf32>
    %189 = math.exp %188 : vector<16x16xf32>
    %c0_68 = arith.constant 0 : index
    %c2_69 = arith.constant 2 : index
    %190 = vector.load %arg5[%c0_68, %c2_69] : memref<16x20xf32, #tpu.memory_space<vmem>>, vector<16x16xf32>
    tpu.vector_store %arg5[%c0_68, %c2_69], %189 {strides = array<i32>} : memref<16x20xf32, #tpu.memory_space<vmem>>, vector<16x16xf32>,
    %c0_70 = arith.constant 0 : index
    %c0_71 = arith.constant 0 : index
    %191 = vector.load %arg5[%c0_70, %c0_71] : memref<16x20xf32, #tpu.memory_space<vmem>>, vector<16x20xf32>
    %cst_72 = arith.constant 0.000000e+00 : f32
    %192 = vector.broadcast %cst_72 : f32 to vector<16x16xf32>
    %c0_i32_73 = arith.constant 0 : i32
    %193 = arith.addi %184, %c0_i32_73 : i32
    %194 = arith.index_cast %193 : i32 to index
    %195 = memref.load %arg2[%194] : memref<20xf32, #tpu.memory_space<smem>>
    %196 = vector.extract_strided_slice %191 {offsets = [0, 0], sizes = [16, 16], strides = [1, 1]} : vector<16x20xf32> to vector<16x16xf32>
    %197 = vector.broadcast %195 : f32 to vector<16x16xf32>
    %198 = arith.mulf %197, %196 : vector<16x16xf32>
    %199 = arith.addf %192, %198 : vector<16x16xf32>
    %c1_i32_74 = arith.constant 1 : i32
    %200 = arith.addi %184, %c1_i32_74 : i32
    %201 = arith.index_cast %200 : i32 to index
    %202 = memref.load %arg2[%201] : memref<20xf32, #tpu.memory_space<smem>>
    %203 = vector.extract_strided_slice %191 {offsets = [0, 1], sizes = [16, 16], strides = [1, 1]} : vector<16x20xf32> to vector<16x16xf32>
    %204 = vector.broadcast %202 : f32 to vector<16x16xf32>
    %205 = arith.mulf %204, %203 : vector<16x16xf32>
    %206 = arith.addf %199, %205 : vector<16x16xf32>
    %c2_i32_75 = arith.constant 2 : i32
    %207 = arith.addi %184, %c2_i32_75 : i32
    %208 = arith.index_cast %207 : i32 to index
    %209 = memref.load %arg2[%208] : memref<20xf32, #tpu.memory_space<smem>>
    %210 = vector.extract_strided_slice %191 {offsets = [0, 2], sizes = [16, 16], strides = [1, 1]} : vector<16x20xf32> to vector<16x16xf32>
    %211 = vector.broadcast %209 : f32 to vector<16x16xf32>
    %212 = arith.mulf %211, %210 : vector<16x16xf32>
    %213 = arith.addf %206, %212 : vector<16x16xf32>
    %c3_i32_76 = arith.constant 3 : i32
    %214 = arith.addi %184, %c3_i32_76 : i32
    %215 = arith.index_cast %214 : i32 to index
    %216 = memref.load %arg2[%215] : memref<20xf32, #tpu.memory_space<smem>>
    %217 = vector.extract_strided_slice %191 {offsets = [0, 3], sizes = [16, 16], strides = [1, 1]} : vector<16x20xf32> to vector<16x16xf32>
    %218 = vector.broadcast %216 : f32 to vector<16x16xf32>
    %219 = arith.mulf %218, %217 : vector<16x16xf32>
    %220 = arith.addf %213, %219 : vector<16x16xf32>
    %c4_i32_77 = arith.constant 4 : i32
    %221 = arith.addi %184, %c4_i32_77 : i32
    %222 = arith.index_cast %221 : i32 to index
    %223 = memref.load %arg2[%222] : memref<20xf32, #tpu.memory_space<smem>>
    %224 = vector.extract_strided_slice %191 {offsets = [0, 4], sizes = [16, 16], strides = [1, 1]} : vector<16x20xf32> to vector<16x16xf32>
    %225 = vector.broadcast %223 : f32 to vector<16x16xf32>
    %226 = arith.mulf %225, %224 : vector<16x16xf32>
    %227 = arith.addf %220, %226 : vector<16x16xf32>
    %c2_78 = arith.constant 2 : index
    %c0_79 = arith.constant 0 : index
    %228 = vector.load %arg6[%c2_78, %c0_79] : memref<20x16xf32, #tpu.memory_space<vmem>>, vector<16x16xf32>
    tpu.vector_store %arg6[%c2_78, %c0_79], %227 {strides = array<i32>} : memref<20x16xf32, #tpu.memory_space<vmem>>, vector<16x16xf32>,
    %c0_80 = arith.constant 0 : index
    %c0_81 = arith.constant 0 : index
    %229 = vector.load %arg6[%c0_80, %c0_81] : memref<20x16xf32, #tpu.memory_space<vmem>>, vector<20x16xf32>
    %cst_82 = arith.constant 0.000000e+00 : f32
    %230 = vector.broadcast %cst_82 : f32 to vector<16x16xf32>
    %c0_i32_83 = arith.constant 0 : i32
    %231 = arith.addi %184, %c0_i32_83 : i32
    %232 = arith.index_cast %231 : i32 to index
    %233 = memref.load %arg2[%232] : memref<20xf32, #tpu.memory_space<smem>>
    %234 = vector.extract_strided_slice %229 {offsets = [0, 0], sizes = [16, 16], strides = [1, 1]} : vector<20x16xf32> to vector<16x16xf32>
    %235 = vector.broadcast %233 : f32 to vector<16x16xf32>
    %236 = arith.mulf %235, %234 : vector<16x16xf32>
    %237 = arith.addf %230, %236 : vector<16x16xf32>
    %c1_i32_84 = arith.constant 1 : i32
    %238 = arith.addi %184, %c1_i32_84 : i32
    %239 = arith.index_cast %238 : i32 to index
    %240 = memref.load %arg2[%239] : memref<20xf32, #tpu.memory_space<smem>>
    %241 = vector.extract_strided_slice %229 {offsets = [1, 0], sizes = [16, 16], strides = [1, 1]} : vector<20x16xf32> to vector<16x16xf32>
    %242 = vector.broadcast %240 : f32 to vector<16x16xf32>
    %243 = arith.mulf %242, %241 : vector<16x16xf32>
    %244 = arith.addf %237, %243 : vector<16x16xf32>
    %c2_i32_85 = arith.constant 2 : i32
    %245 = arith.addi %184, %c2_i32_85 : i32
    %246 = arith.index_cast %245 : i32 to index
    %247 = memref.load %arg2[%246] : memref<20xf32, #tpu.memory_space<smem>>
    %248 = vector.extract_strided_slice %229 {offsets = [2, 0], sizes = [16, 16], strides = [1, 1]} : vector<20x16xf32> to vector<16x16xf32>
    %249 = vector.broadcast %247 : f32 to vector<16x16xf32>
    %250 = arith.mulf %249, %248 : vector<16x16xf32>
    %251 = arith.addf %244, %250 : vector<16x16xf32>
    %c3_i32_86 = arith.constant 3 : i32
    %252 = arith.addi %184, %c3_i32_86 : i32
    %253 = arith.index_cast %252 : i32 to index
    %254 = memref.load %arg2[%253] : memref<20xf32, #tpu.memory_space<smem>>
    %255 = vector.extract_strided_slice %229 {offsets = [3, 0], sizes = [16, 16], strides = [1, 1]} : vector<20x16xf32> to vector<16x16xf32>
    %256 = vector.broadcast %254 : f32 to vector<16x16xf32>
    %257 = arith.mulf %256, %255 : vector<16x16xf32>
    %258 = arith.addf %251, %257 : vector<16x16xf32>
    %c4_i32_87 = arith.constant 4 : i32
    %259 = arith.addi %184, %c4_i32_87 : i32
    %260 = arith.index_cast %259 : i32 to index
    %261 = memref.load %arg2[%260] : memref<20xf32, #tpu.memory_space<smem>>
    %262 = vector.extract_strided_slice %229 {offsets = [4, 0], sizes = [16, 16], strides = [1, 1]} : vector<20x16xf32> to vector<16x16xf32>
    %263 = vector.broadcast %261 : f32 to vector<16x16xf32>
    %264 = arith.mulf %263, %262 : vector<16x16xf32>
    %265 = arith.addf %258, %264 : vector<16x16xf32>
    %cst_88 = arith.constant 1.1920929E-7 : f32
    %266 = vector.broadcast %cst_88 : f32 to vector<16x16xf32>
    %267 = arith.addf %265, %266 : vector<16x16xf32>
    %268 = math.log %267 : vector<16x16xf32>
    %c0_89 = arith.constant 0 : index
    %c2_90 = arith.constant 2 : index
    %c0_91 = arith.constant 0 : index
    %c0_92 = arith.constant 0 : index
    %269 = vector.load %arg4[%c0_89, %c2_90, %c0_91, %c0_92] : memref<1x4x16x16xf32, #tpu.memory_space<vmem>>, vector<1x1x16x16xf32>
    %270 = vector.shape_cast %269 : vector<1x1x16x16xf32> to vector<16x16xf32>
    %271 = vector.shape_cast %268 : vector<16x16xf32> to vector<1x1x16x16xf32>
    tpu.vector_store %arg4[%c0_89, %c2_90, %c0_91, %c0_92], %271 {strides = array<i32>} : memref<1x4x16x16xf32, #tpu.memory_space<vmem>>, vector<1x1x16x16xf32>,
    %c3_i32_93 = arith.constant 3 : i32
    %272 = arith.addi %4, %c3_i32_93 : i32
    %c5_i32_94 = arith.constant 5 : i32
    %273 = arith.muli %272, %c5_i32_94 : i32
    %c0_95 = arith.constant 0 : index
    %c3 = arith.constant 3 : index
    %c0_96 = arith.constant 0 : index
    %c0_97 = arith.constant 0 : index
    %274 = vector.load %arg3[%c0_95, %c3, %c0_96, %c0_97] : memref<1x4x16x16xf32, #tpu.memory_space<vmem>>, vector<1x1x16x16xf32>
    %275 = vector.shape_cast %274 : vector<1x1x16x16xf32> to vector<16x16xf32>
    %cst_98 = arith.constant 88.7228317 : f32
    %276 = vector.broadcast %cst_98 : f32 to vector<16x16xf32>
    %277 = arith.minimumf %275, %276 : vector<16x16xf32>
    %278 = math.exp %277 : vector<16x16xf32>
    %c0_99 = arith.constant 0 : index
    %c2_100 = arith.constant 2 : index
    %279 = vector.load %arg5[%c0_99, %c2_100] : memref<16x20xf32, #tpu.memory_space<vmem>>, vector<16x16xf32>
    tpu.vector_store %arg5[%c0_99, %c2_100], %278 {strides = array<i32>} : memref<16x20xf32, #tpu.memory_space<vmem>>, vector<16x16xf32>,
    %c0_101 = arith.constant 0 : index
    %c0_102 = arith.constant 0 : index
    %280 = vector.load %arg5[%c0_101, %c0_102] : memref<16x20xf32, #tpu.memory_space<vmem>>, vector<16x20xf32>
    %cst_103 = arith.constant 0.000000e+00 : f32
    %281 = vector.broadcast %cst_103 : f32 to vector<16x16xf32>
    %c0_i32_104 = arith.constant 0 : i32
    %282 = arith.addi %273, %c0_i32_104 : i32
    %283 = arith.index_cast %282 : i32 to index
    %284 = memref.load %arg2[%283] : memref<20xf32, #tpu.memory_space<smem>>
    %285 = vector.extract_strided_slice %280 {offsets = [0, 0], sizes = [16, 16], strides = [1, 1]} : vector<16x20xf32> to vector<16x16xf32>
    %286 = vector.broadcast %284 : f32 to vector<16x16xf32>
    %287 = arith.mulf %286, %285 : vector<16x16xf32>
    %288 = arith.addf %281, %287 : vector<16x16xf32>
    %c1_i32_105 = arith.constant 1 : i32
    %289 = arith.addi %273, %c1_i32_105 : i32
    %290 = arith.index_cast %289 : i32 to index
    %291 = memref.load %arg2[%290] : memref<20xf32, #tpu.memory_space<smem>>
    %292 = vector.extract_strided_slice %280 {offsets = [0, 1], sizes = [16, 16], strides = [1, 1]} : vector<16x20xf32> to vector<16x16xf32>
    %293 = vector.broadcast %291 : f32 to vector<16x16xf32>
    %294 = arith.mulf %293, %292 : vector<16x16xf32>
    %295 = arith.addf %288, %294 : vector<16x16xf32>
    %c2_i32_106 = arith.constant 2 : i32
    %296 = arith.addi %273, %c2_i32_106 : i32
    %297 = arith.index_cast %296 : i32 to index
    %298 = memref.load %arg2[%297] : memref<20xf32, #tpu.memory_space<smem>>
    %299 = vector.extract_strided_slice %280 {offsets = [0, 2], sizes = [16, 16], strides = [1, 1]} : vector<16x20xf32> to vector<16x16xf32>
    %300 = vector.broadcast %298 : f32 to vector<16x16xf32>
    %301 = arith.mulf %300, %299 : vector<16x16xf32>
    %302 = arith.addf %295, %301 : vector<16x16xf32>
    %c3_i32_107 = arith.constant 3 : i32
    %303 = arith.addi %273, %c3_i32_107 : i32
    %304 = arith.index_cast %303 : i32 to index
    %305 = memref.load %arg2[%304] : memref<20xf32, #tpu.memory_space<smem>>
    %306 = vector.extract_strided_slice %280 {offsets = [0, 3], sizes = [16, 16], strides = [1, 1]} : vector<16x20xf32> to vector<16x16xf32>
    %307 = vector.broadcast %305 : f32 to vector<16x16xf32>
    %308 = arith.mulf %307, %306 : vector<16x16xf32>
    %309 = arith.addf %302, %308 : vector<16x16xf32>
    %c4_i32_108 = arith.constant 4 : i32
    %310 = arith.addi %273, %c4_i32_108 : i32
    %311 = arith.index_cast %310 : i32 to index
    %312 = memref.load %arg2[%311] : memref<20xf32, #tpu.memory_space<smem>>
    %313 = vector.extract_strided_slice %280 {offsets = [0, 4], sizes = [16, 16], strides = [1, 1]} : vector<16x20xf32> to vector<16x16xf32>
    %314 = vector.broadcast %312 : f32 to vector<16x16xf32>
    %315 = arith.mulf %314, %313 : vector<16x16xf32>
    %316 = arith.addf %309, %315 : vector<16x16xf32>
    %c2_109 = arith.constant 2 : index
    %c0_110 = arith.constant 0 : index
    %317 = vector.load %arg6[%c2_109, %c0_110] : memref<20x16xf32, #tpu.memory_space<vmem>>, vector<16x16xf32>
    tpu.vector_store %arg6[%c2_109, %c0_110], %316 {strides = array<i32>} : memref<20x16xf32, #tpu.memory_space<vmem>>, vector<16x16xf32>,
    %c0_111 = arith.constant 0 : index
    %c0_112 = arith.constant 0 : index
    %318 = vector.load %arg6[%c0_111, %c0_112] : memref<20x16xf32, #tpu.memory_space<vmem>>, vector<20x16xf32>
    %cst_113 = arith.constant 0.000000e+00 : f32
    %319 = vector.broadcast %cst_113 : f32 to vector<16x16xf32>
    %c0_i32_114 = arith.constant 0 : i32
    %320 = arith.addi %273, %c0_i32_114 : i32
    %321 = arith.index_cast %320 : i32 to index
    %322 = memref.load %arg2[%321] : memref<20xf32, #tpu.memory_space<smem>>
    %323 = vector.extract_strided_slice %318 {offsets = [0, 0], sizes = [16, 16], strides = [1, 1]} : vector<20x16xf32> to vector<16x16xf32>
    %324 = vector.broadcast %322 : f32 to vector<16x16xf32>
    %325 = arith.mulf %324, %323 : vector<16x16xf32>
    %326 = arith.addf %319, %325 : vector<16x16xf32>
    %c1_i32_115 = arith.constant 1 : i32
    %327 = arith.addi %273, %c1_i32_115 : i32
    %328 = arith.index_cast %327 : i32 to index
    %329 = memref.load %arg2[%328] : memref<20xf32, #tpu.memory_space<smem>>
    %330 = vector.extract_strided_slice %318 {offsets = [1, 0], sizes = [16, 16], strides = [1, 1]} : vector<20x16xf32> to vector<16x16xf32>
    %331 = vector.broadcast %329 : f32 to vector<16x16xf32>
    %332 = arith.mulf %331, %330 : vector<16x16xf32>
    %333 = arith.addf %326, %332 : vector<16x16xf32>
    %c2_i32_116 = arith.constant 2 : i32
    %334 = arith.addi %273, %c2_i32_116 : i32
    %335 = arith.index_cast %334 : i32 to index
    %336 = memref.load %arg2[%335] : memref<20xf32, #tpu.memory_space<smem>>
    %337 = vector.extract_strided_slice %318 {offsets = [2, 0], sizes = [16, 16], strides = [1, 1]} : vector<20x16xf32> to vector<16x16xf32>
    %338 = vector.broadcast %336 : f32 to vector<16x16xf32>
    %339 = arith.mulf %338, %337 : vector<16x16xf32>
    %340 = arith.addf %333, %339 : vector<16x16xf32>
    %c3_i32_117 = arith.constant 3 : i32
    %341 = arith.addi %273, %c3_i32_117 : i32
    %342 = arith.index_cast %341 : i32 to index
    %343 = memref.load %arg2[%342] : memref<20xf32, #tpu.memory_space<smem>>
    %344 = vector.extract_strided_slice %318 {offsets = [3, 0], sizes = [16, 16], strides = [1, 1]} : vector<20x16xf32> to vector<16x16xf32>
    %345 = vector.broadcast %343 : f32 to vector<16x16xf32>
    %346 = arith.mulf %345, %344 : vector<16x16xf32>
    %347 = arith.addf %340, %346 : vector<16x16xf32>
    %c4_i32_118 = arith.constant 4 : i32
    %348 = arith.addi %273, %c4_i32_118 : i32
    %349 = arith.index_cast %348 : i32 to index
    %350 = memref.load %arg2[%349] : memref<20xf32, #tpu.memory_space<smem>>
    %351 = vector.extract_strided_slice %318 {offsets = [4, 0], sizes = [16, 16], strides = [1, 1]} : vector<20x16xf32> to vector<16x16xf32>
    %352 = vector.broadcast %350 : f32 to vector<16x16xf32>
    %353 = arith.mulf %352, %351 : vector<16x16xf32>
    %354 = arith.addf %347, %353 : vector<16x16xf32>
    %cst_119 = arith.constant 1.1920929E-7 : f32
    %355 = vector.broadcast %cst_119 : f32 to vector<16x16xf32>
    %356 = arith.addf %354, %355 : vector<16x16xf32>
    %357 = math.log %356 : vector<16x16xf32>
    %c0_120 = arith.constant 0 : index
    %c3_121 = arith.constant 3 : index
    %c0_122 = arith.constant 0 : index
    %c0_123 = arith.constant 0 : index
    %358 = vector.load %arg4[%c0_120, %c3_121, %c0_122, %c0_123] : memref<1x4x16x16xf32, #tpu.memory_space<vmem>>, vector<1x1x16x16xf32>
    %359 = vector.shape_cast %358 : vector<1x1x16x16xf32> to vector<16x16xf32>
    %360 = vector.shape_cast %357 : vector<16x16xf32> to vector<1x1x16x16xf32>
    tpu.vector_store %arg4[%c0_120, %c3_121, %c0_122, %c0_123], %360 {strides = array<i32>} : memref<1x4x16x16xf32, #tpu.memory_space<vmem>>, vector<1x1x16x16xf32>,
    return
  }
  func.func @transform_0(%arg0: i32, %arg1: i32, %arg2: memref<20xf32, #tpu.memory_space<smem>>) -> (i32, i32, i32, i32) {
    %c0_i32 = arith.constant 0 : i32
    %c0_i32_0 = arith.constant 0 : i32
    %c0_i32_1 = arith.constant 0 : i32
    return %arg0, %arg1, %c0_i32, %c0_i32_0 : i32, i32, i32, i32
  }
  func.func @transform_1(%arg0: i32, %arg1: i32, %arg2: memref<20xf32, #tpu.memory_space<smem>>) -> (i32, i32, i32, i32) {
    %c0_i32 = arith.constant 0 : i32
    %c0_i32_0 = arith.constant 0 : i32
    %c0_i32_1 = arith.constant 0 : i32
    return %arg0, %arg1, %c0_i32, %c0_i32_0 : i32, i32, i32, i32
  }
}

</mosaic_0001>

<bundles_post_ra>
// kernel: tpu_custom_call.1
= control target key start
LH: loop header
LB: loop body
LE: loop exit
PB: predicated region body
PF: predicated region fallthrough
CT: control target
= control target key end

     0   :  { %s1276_s9 = smov [#allocation5]   ;;  %s1749_s0 = inlined_call_operand.hbm [shape: f32[20], index: 0, kind: input, shape index: {}]   ;;  %s1750_s1 = inlined_call_operand.hbm [shape: f32[2,4,16,16], index: 1, kind: input, shape index: {}]   ;;  %s1751_s2 = inlined_call_operand.hbm [shape: f32[2,4,16,16], index: 2, kind: output, shape index: {}]  }
   0x1   :  { %8 = dma.hbm_to_smem %s1749_s0, 16, %s1276_s9, [#allocation4] }
   0x2   :  { %1242 = dma.done.wait [#allocation4], 16 }
   0x3   :  { %1243 = vsyncadd [#allocation4], 4294967280 }
   0x4   :  { %10 = sfence }
   0x5   :  { %11 = vsyncpa [#allocation7], 0 }
   0x6   :  { %13 = vsyncpa [#allocation7 + $0x1], 0 }
   0x7   :  { %14 = vsyncpa [#allocation8], 0 }
   0x8   :  { %16 = vsyncpa [#allocation8 + $0x1], 0  ;;  %s1307_s12 = smov 0   ;;  %s1309_s13 = smov 0  }
   0x9   :  { %s1311_s14 = smov 0   ;;  %s1313_s15 = smov 0  }
   0xa   :  { %s1315_s16 = smov 0   ;;  %s1317_s17 = smov 0  }
   0xb LB: > { %s984_s0 = sadd.s32 4294967295, %s1274_s17   ;;  %s985_s18 = sadd.s32 4294967294, %s1274_s17   ;;  %s1274_s17 = sphi %s1317_s17, %s22_s17   ;;  %s1270_s16 = sphi %s1315_s16, %s1762_s16   ;;  %s1266_s15 = sphi %s1313_s15, %s1761_s15   ;;  %s1262_s14 = sphi %s1311_s14, %s1760_s14   ;;  %s1258_s13 = sphi %s1309_s13, %s1759_s13   ;;  %s1254_s12 = sphi %s1307_s12, %s1758_s12  }
   0xc   : > { %s34_s19 = sadd.s32 1, %s1270_s16  ;;  %s43_s20 = sadd.s32 1, %s1262_s14 }
   0xd   : > { %p36_p0 = scmp.ge.s32.totalorder %s34_s19, 2  ;;  %p50_p1 = scmp.ne.s32.totalorder %s1262_s14, %s1258_s13 }
   0xe   : > { %p51_p2 = scmp.eq.s32.totalorder %s1274_s17, 0  ;;  %p56_p3 = scmp.ne.s32.totalorder %s1258_s13, %s1254_s12 }
   0xf   : > { %s1764_s19 = smov (%p36_p0, %s34_s19), 0  ;;  %p57_p5 = scmp.eq.s32.totalorder %s984_s0, 0 }
  0x10   : > { %p1348_p4 = por %p51_p2, %p50_p1  ;;  %s38_s22 = ssub.s32 %s1270_s16, %s1764_s19 }
  0x11   : > { %p82_p6 = scmp.eq.s32.totalorder %s984_s0, 1  ;;  %p41_p7 = scmp.eq.s32.totalorder %s38_s22, 0 }
  0x12   : > { %p1354_p8 = por %p57_p5, %p56_p3  ;;  %p88_p10 = scmp.eq.s32.totalorder %s985_s18, 1 }
  0x13   : > { %p1358_p9 = por %p82_p6, %p50_p1  ;;  %p1063_p13 = scmp.lt.s32.totalorder %s1274_s17, 2 }
  0x14   : > { %s1363_s25 = scalar_select %p41_p7, %s1262_s14, %s43_s20  }
  0x15   : > { %p1365_p11 = por %p88_p10, %p56_p3  ;;  %s108_s27 = sand.u32 1, %s1262_s14  }
  0x16   : > { %s988_s28 = sshll.u32 %s108_s27, 6  ;;  %s1049_s29 = sshll.u32 %s1270_s16, 10 }
  0x17   : > { %s121_s4 = scalar_lea.hbm %s1750_s1, %s1049_s29  ;;  %s112_s5 = scalar_lea.vmem [#allocation6], %s988_s28 }
  0x18   : > { %s122_s6 = sshll.u32 %s112_s5, 4  ;;  %p1378_p0 = pnand %p1063_p13, %p1348_p4  ;;  %s123_s6 = int_to_ptr.vmem [resolvable:$true] %s122_s6 }
  0x19   : > { %p991_p1 = scmp.ge.s32.totalorder %s1274_s17, 1  ;;  %s109_s8 = scalar_lea.sflag [#allocation7], %s108_s27 }
  0x1a   : > { %p1166_p2 = pneg %p1378_p0  ;;  %s1177_s9 = scalar_lea.vmem %s123_s6, 1024 }
  0x1b   : > { %p1178_p3 = scmp.ne.s32.totalorder %s123_s6, %s1177_s9  ;;  %s1277_s10 = smov [#allocation6]  }
  0x1c   : > { %s1182_s11 = sshll.u32 %s1277_s10, 4  ;;  %s1183_s11 = int_to_ptr.vmem [resolvable:$false] %s1182_s11 }
  0x1d   : > { %p1180_p5 = pnand %p1178_p3, %p1166_p2  ;;  %s1184_s0 = scalar_lea.vmem %s1183_s11, 2048 }
  0x1e   : > { %p1185_p7 = scmp.lt.s32.totalorder %s123_s6, %s1183_s11  ;;  %p1186_p10 = scmp.lt.s32.totalorder %s1184_s0, %s1177_s9 }
  0x1f   : > { %p1181_p6 = pneg %p1180_p5 }
  0x20   : > { %p1187_p12 = por %p1186_p10, %p1185_p7 }
  0x22   : > { %p1188_p4 = pnand %p1187_p12, %p1181_p6 }
  0x24   : > { %1191 = shalt.err (!%p1188_p4)
}
  0x25   : > { %s1278_s18 = smov 128   ;;  %s1279_s20 = smov 8  }
  0x26   : > { %1058 = dma.hbm_to_vmem [thread:$0]  (!%p1378_p0), %s121_s4, 1024, %s123_s6, %s109_s8, %s1278_s18, %s1278_s18, %s1279_s20  }
  0x27   : > { %p130_p13 = scmp.lt.s32.totalorder %s1274_s17, 3 }
  0x29   : > { %p131_p2 = pnand %p991_p1, %p130_p13 }
  0x2a   : > { %s1391_s21 = sand.u32 (!%p131_p2), 1, %s1258_s13  }
  0x2b   : > { %134 = sbr.rel (%p131_p2) target bundleno = 428 (0x1ac), region = 24  ;;  %s992_s22 = sshll.u32 (!%p131_p2), %s1391_s21, 6 }
  0x2c   : > { %s137_s27 = scalar_lea.sflag (!%p131_p2), [#allocation7], %s1391_s21  ;;  %s140_s28 = scalar_lea.vmem (!%p131_p2), [#allocation6], %s992_s22 }
  0x30   : > { %1245 = dma.done.wait (%p1354_p8), %s137_s27, 1024  }
  0x31   : > { %1247 = vsyncadd (%p1354_p8), %s137_s27, 4294966272  ;;  %vm161_vm0 = vcmask 162816   ;;  %v1280_v0 = vmov 0.0   ;;  %v171_v1 = vld [vmem:[%s140_s28] sm:$0xff]  ;;  %v172_v2 = vld [vmem:[%s140_s28 + $0x8] sm:$0xff]  ;;  %s1281_s23 = smov 2  }
  0x32   : > { %162 = vst.msk [vmem:[#allocation2] sm:$0xff] %vm161_vm0, %v1280_v0  ;;  %163 = vst.msk [vmem:[#allocation2 + $0x8] sm:$0xff] %vm161_vm0, %v1280_v0  ;;  %v1002_v3 = vld [vmem:[%s140_s28 + $0x10] sm:$0xff]  ;;  %v173_v4 = vmin.f32 %v171_v1, 88.72283  ;;  %v1003_v7 = vld [vmem:[%s140_s28 + $0x18] sm:$0xff] }
  0x33   : > { %v174_v5 = vmin.f32 %v172_v2, 88.72283  ;;  %v354_v6 = vmin.f32 %v1002_v3, 88.72283  ;;  %v1016_v8 = vld [vmem:[%s140_s28 + $0x20] sm:$0xff]  ;;  %v1017_v9 = vld [vmem:[%s140_s28 + $0x28] sm:$0xff] }
  0x34   : > { %v175_v10 = vmul.f32 1.442695, %v173_v4  ;;  %v355_v13 = vmin.f32 %v1003_v7, 88.72283  ;;  %v531_v14 = vmin.f32 %v1016_v8, 88.72283 }
  0x35   : > { %v177_v11 = vmul.f32 1.442695, %v174_v5  ;;  %v356_v12 = vmul.f32 1.442695, %v354_v6  ;;  %v532_v15 = vmin.f32 %v1017_v9, 88.72283 }
  0x36   : > { %1124 = vpow2.f32 %v175_v10  ;;  %v1030_v16 = vld [vmem:[%s140_s28 + $0x30] sm:$0xff]  ;;  %v358_v17 = vmul.f32 1.442695, %v355_v13  ;;  %v1031_v18 = vld [vmem:[%s140_s28 + $0x38] sm:$0xff]  ;;  %v533_v19 = vmul.f32 1.442695, %v531_v14 }
  0x37   : > { %1126 = vpow2.f32 %v177_v11  ;;  %v708_v20 = vmin.f32 %v1030_v16, 88.72283  ;;  %v535_v21 = vmul.f32 1.442695, %v532_v15  ;;  %v709_v22 = vmin.f32 %v1031_v18, 88.72283 }
  0x38   : > { %1128 = vpow2.f32 %v356_v12  ;;  %vm187_vm1 = vcmask 146448   ;;  %s994_s29 = sld [smem:[#allocation5 + $0x1]]  ;;  %vm164_vm2 = vcmask 130048   ;;  %s1282_s5 = smov 127   ;;  %vm167_vm3 = vcmask 125952  }
  0x39   : > { %1130 = vpow2.f32 %v358_v17  ;;  %v710_v23 = vmul.f32 1.442695, %v708_v20  ;;  %v712_v24 = vmul.f32 1.442695, %v709_v22  ;;  %s995_s30 = sld [smem:[#allocation5 + $0x2]]  ;;  %165 = vst.msk [vmem:[#allocation3] sm:$0xff] %vm164_vm2, %v1280_v0 }
  0x3a   : > { %1132 = vpow2.f32 %v533_v19  ;;  %s996_s3 = sld [smem:[#allocation5 + $0x3]]  ;;  %166 = vst.msk [vmem:[#allocation3 + $0x8] sm:$0xff] %vm164_vm2, %v1280_v0  ;;  %s1283_s7 = smov 126   ;;  %vm277_vm4 = vcmask 1046528   ;;  %vm295_vm5 = vcmask 1045504   ;;  %vm313_vm6 = vcmask 1044480  }
  0x3b   : > { %1134 = vpow2.f32 %v535_v21  ;;  %s997_s4 = sld [smem:[#allocation5 + $0x4]]  ;;  %168 = vst.msk [vmem:[#allocation3 + $0x10] sm:$0xf] %vm167_vm3, %v1280_v0  ;;  %s1284_s9 = smov 125   ;;  %vm331_vm7 = vcmask 1043456  }
  0x3c   : > { %1136 = vpow2.f32 %v710_v23  ;;  %s1005_s6 = sld [smem:[#allocation5 + $0x6]]  ;;  %s1285_s11 = smov 124  }
  0x3d   : > { %1138 = vpow2.f32 %v712_v24  ;;  %s1006_s8 = sld [smem:[#allocation5 + $0x7]] }
  0x3e   : > { %v1405_v36 = vstv %s994_s29  ;;  %s1007_s10 = sld [smem:[#allocation5 + $0x8]] }
  0x3f   : > { %v1412_v39 = vstv %s995_s30  ;;  %s1008_s0 = sld [smem:[#allocation5 + $0x9]] }
  0x40   : > { %v1427_v44 = vstv %s996_s3  ;;  %s1019_s18 = sld [smem:[#allocation5 + $0xb]] }
  0x41   : > { %v1438_v49 = vstv %s997_s4  ;;  %s1020_s20 = sld [smem:[#allocation5 + $0xc]] }
  0x42   : > { %v1442_v51 = vstv %s1005_s6  ;;  %s1021_s27 = sld [smem:[#allocation5 + $0xd]] }
  0x43   : > { %v1125_v25 = vpop.eup %1124  ;;  %v1460_v59 = vstv %s1006_s8  ;;  %s1022_s28 = sld [smem:[#allocation5 + $0xe]]  ;;  %s1631_s8 = scalar_lea.vmem [#allocation9], %s992_s22 }
  0x44   : > { %v1127_v26 = vpop.eup %1126  ;;  %181 = vrot.lane.b32.xlu0 %v1125_v25, %s1281_s23  ;;  %v1471_v0 = vstv %s1007_s10  ;;  %s1034_s29 = sld [smem:[#allocation5 + $0x11]]  ;;  %s1050_s22 = sshll.u32 %s1266_s15, 10 }
  0x45   : > { %v1129_v27 = vpop.eup %1128  ;;  %v1479_v3 = vstv %s1008_s0  ;;  %s1035_s30 = sld [smem:[#allocation5 + $0x12]]  ;;  %s1695_s0 = scalar_lea.hbm %s1751_s2, %s1050_s22 }
  0x46   : > { %362 = vrot.lane.b32.xlu1 %v1129_v27, %s1281_s23  ;;  %v1131_v28 = vpop.eup %1130  ;;  %v1483_v4 = vstv %s1019_s18  ;;  %s1036_s3 = sld [smem:[#allocation5 + $0x13]]  ;;  %s881_s15 = scalar_lea.sflag [#allocation8], %s1391_s21 }
  0x47   : > { %v1133_v29 = vpop.eup %1132  ;;  %v1493_v8 = vstv %s1020_s20  ;;  %s192_s4 = sld [smem:[#allocation5]]  ;;  %s1286_s20 = smov [#allocation9]  }
  0x48   : > { %183 = vrot.lane.b32.xlu0 %v1127_v26, %s1281_s23  ;;  %v1135_v30 = vpop.eup %1134  ;;  %v1503_v12 = vstv %s1021_s27  ;;  %s1018_s6 = sld [smem:[#allocation5 + $0xa]]  ;;  %s1196_s27 = sshll.u32 %s1286_s20, 4  ;;  %s1197_s27 = int_to_ptr.vmem [resolvable:$false] %s1196_s27 }
  0x49   : > { %v1137_v31 = vpop.eup %1136  ;;  %v1511_v15 = vstv %s1022_s28  ;;  %s1198_s28 = scalar_lea.vmem %s1197_s27, 2048 }
  0x4a   : > { %364 = vrot.lane.b32.xlu1 %v1131_v28, %s1281_s23  ;;  %v1139_v32 = vpop.eup %1138  ;;  %v1529_v22 = vstv %s1034_s29 }
  0x4b   : > { %v1539_v26 = vstv %s1035_s30 }
  0x4c   : > { %539 = vrot.lane.b32.xlu0 %v1133_v29, %s1281_s23  ;;  %v1547_v29 = vstv %s1036_s3 }
  0x4e   : > { %541 = vrot.lane.b32.xlu1 %v1135_v30, %s1281_s23 }
  0x50   : > { %716 = vrot.lane.b32.xlu0 %v1137_v31, %s1281_s23 }
  0x52   : > { %718 = vrot.lane.b32.xlu1 %v1139_v32, %s1281_s23  ;;  %s1033_s23 = sld [smem:[#allocation5 + $0x10]] }
  0x58   : > { %v1517_v17 = vstv %s1033_s23 }
  0xb6   : > { %v182_v33 = vpop.permute.xlu0 %181 }
  0xb7   : > { %188 = vst.msk [vmem:[#allocation2] sm:$0xff] %vm187_vm1, %v182_v33 }
  0xb8   : > { %v363_v35 = vpop.permute.xlu1 %362 }
  0xba   : > { %v184_v34 = vpop.permute.xlu0 %183 }
  0xbb   : > { %189 = vst.msk [vmem:[#allocation2 + $0x8] sm:$0xff] %vm187_vm1, %v184_v34  ;;  %v193_v34 = vstv %s192_s4 }
  0xbc   : > { %v365_v40 = vpop.permute.xlu1 %364 }
  0xbe   : > { %v1407_v37 = vld [vmem:[#allocation2] sm:$0xff]  ;;  %v540_v45 = vpop.permute.xlu0 %539 }
  0xbf   : > { %v201_v38 = vmul.f32 %v1405_v36, %v1407_v37  ;;  %368 = vst.msk [vmem:[#allocation2] sm:$0xff] %vm187_vm1, %v363_v35  ;;  %v216_v43 = vmul.f32 %v1412_v39, %v1407_v37  ;;  %v231_v48 = vmul.f32 %v1427_v44, %v1407_v37  ;;  %v246_v54 = vmul.f32 %v1438_v49, %v1407_v37 }
  0xc0   : > { %v542_v50 = vpop.permute.xlu1 %541 }
  0xc1   : > { %205 = vrot.lane.b32.xlu0 %v201_v38, %s1282_s5 }
  0xc2   : > { %v1419_v41 = vld [vmem:[#allocation2 + $0x8] sm:$0xff]  ;;  %v717_v55 = vpop.permute.xlu0 %716 }
  0xc3   : > { %v202_v42 = vmul.f32 %v1405_v36, %v1419_v41  ;;  %369 = vst.msk [vmem:[#allocation2 + $0x8] sm:$0xff] %vm187_vm1, %v365_v40  ;;  %v217_v47 = vmul.f32 %v1412_v39, %v1419_v41  ;;  %v232_v53 = vmul.f32 %v1427_v44, %v1419_v41  ;;  %v247_v58 = vmul.f32 %v1438_v49, %v1419_v41 }
  0xc4   : > { %v719_v60 = vpop.permute.xlu1 %718  ;;  %v194_v40 = vmul.f32 %v193_v34, %v1407_v37 }
  0xc5   : > { %207 = vrot.lane.b32.xlu1 %v202_v42, %s1282_s5  ;;  %220 = vrot.lane.b32.xlu0 %v216_v43, %s1283_s7 }
  0xc6   : > { %v1431_v46 = vld [vmem:[#allocation2] sm:$0xff] }
  0xc7   : > { %545 = vst.msk [vmem:[#allocation2] sm:$0xff] %vm187_vm1, %v540_v45  ;;  %v381_v56 = vmul.f32 %v1442_v51, %v1431_v46  ;;  %v396_v63 = vmul.f32 %v1460_v59, %v1431_v46  ;;  %v411_v2 = vmul.f32 %v1471_v0, %v1431_v46  ;;  %v426_v6 = vmul.f32 %v1479_v3, %v1431_v46 }
  0xc9   : > { %222 = vrot.lane.b32.xlu1 %v217_v47, %s1283_s7  ;;  %235 = vrot.lane.b32.xlu0 %v231_v48, %s1284_s9  ;;  %v195_v47 = vmul.f32 %v193_v34, %v1419_v41 }
  0xca   : > { %v1444_v52 = vld [vmem:[#allocation2 + $0x8] sm:$0xff] }
  0xcb   : > { %546 = vst.msk [vmem:[#allocation2 + $0x8] sm:$0xff] %vm187_vm1, %v542_v50  ;;  %v382_v61 = vmul.f32 %v1442_v51, %v1444_v52  ;;  %v397_v1 = vmul.f32 %v1460_v59, %v1444_v52  ;;  %v412_v5 = vmul.f32 %v1471_v0, %v1444_v52  ;;  %v427_v9 = vmul.f32 %v1479_v3, %v1444_v52 }
  0xcd   : > { %237 = vrot.lane.b32.xlu1 %v232_v53, %s1284_s9  ;;  %250 = vrot.lane.b32.xlu0 %v246_v54, %s1285_s11 }
  0xce   : > { %v1455_v57 = vld [vmem:[#allocation2] sm:$0xff] }
  0xcf   : > { %722 = vst.msk [vmem:[#allocation2] sm:$0xff] %vm187_vm1, %v717_v55  ;;  %v558_v7 = vmul.f32 %v1483_v4, %v1455_v57  ;;  %v573_v11 = vmul.f32 %v1493_v8, %v1455_v57  ;;  %v588_v14 = vmul.f32 %v1503_v12, %v1455_v57  ;;  %v603_v19 = vmul.f32 %v1511_v15, %v1455_v57 }
  0xd1   : > { %252 = vrot.lane.b32.xlu1 %v247_v58, %s1285_s11  ;;  %385 = vrot.lane.b32.xlu0 %v381_v56, %s1282_s5 }
  0xd2   : > { %v1466_v62 = vld [vmem:[#allocation2 + $0x8] sm:$0xff] }
  0xd3   : > { %723 = vst.msk [vmem:[#allocation2 + $0x8] sm:$0xff] %vm187_vm1, %v719_v60  ;;  %v559_v10 = vmul.f32 %v1483_v4, %v1466_v62  ;;  %v574_v13 = vmul.f32 %v1493_v8, %v1466_v62  ;;  %v589_v18 = vmul.f32 %v1503_v12, %v1466_v62  ;;  %v604_v23 = vmul.f32 %v1511_v15, %v1466_v62 }
  0xd5   : > { %387 = vrot.lane.b32.xlu1 %v382_v61, %s1282_s5  ;;  %400 = vrot.lane.b32.xlu0 %v396_v63, %s1283_s7 }
  0xd6   : > { %v1515_v16 = vld [vmem:[#allocation2] sm:$0xff] }
  0xd7   : > { %v735_v20 = vmul.f32 %v1517_v17, %v1515_v16  ;;  %v750_v25 = vmul.f32 %v1529_v22, %v1515_v16  ;;  %v765_v28 = vmul.f32 %v1539_v26, %v1515_v16  ;;  %v780_v31 = vmul.f32 %v1547_v29, %v1515_v16 }
  0xd9   : > { %402 = vrot.lane.b32.xlu1 %v397_v1, %s1283_s7  ;;  %415 = vrot.lane.b32.xlu0 %v411_v2, %s1284_s9 }
  0xda   : > { %v1527_v21 = vld [vmem:[#allocation2 + $0x8] sm:$0xff] }
  0xdb   : > { %v736_v24 = vmul.f32 %v1517_v17, %v1527_v21  ;;  %v751_v27 = vmul.f32 %v1529_v22, %v1527_v21  ;;  %v766_v30 = vmul.f32 %v1539_v26, %v1527_v21  ;;  %v781_v32 = vmul.f32 %v1547_v29, %v1527_v21 }
  0xdd   : > { %417 = vrot.lane.b32.xlu1 %v412_v5, %s1284_s9  ;;  %430 = vrot.lane.b32.xlu0 %v426_v6, %s1285_s11 }
  0xe1   : > { %432 = vrot.lane.b32.xlu1 %v427_v9, %s1285_s11  ;;  %562 = vrot.lane.b32.xlu0 %v558_v7, %s1282_s5 }
  0xe5   : > { %564 = vrot.lane.b32.xlu1 %v559_v10, %s1282_s5  ;;  %577 = vrot.lane.b32.xlu0 %v573_v11, %s1283_s7 }
  0xe9   : > { %579 = vrot.lane.b32.xlu1 %v574_v13, %s1283_s7  ;;  %592 = vrot.lane.b32.xlu0 %v588_v14, %s1284_s9 }
  0xed   : > { %594 = vrot.lane.b32.xlu1 %v589_v18, %s1284_s9  ;;  %607 = vrot.lane.b32.xlu0 %v603_v19, %s1285_s11 }
  0xf1   : > { %609 = vrot.lane.b32.xlu1 %v604_v23, %s1285_s11  ;;  %739 = vrot.lane.b32.xlu0 %v735_v20, %s1282_s5  ;;  %v1572_v20 = vstv %s1018_s6 }
  0xf5   : > { %741 = vrot.lane.b32.xlu1 %v736_v24, %s1282_s5  ;;  %754 = vrot.lane.b32.xlu0 %v750_v25, %s1283_s7  ;;  %s1004_s5 = sld [smem:[#allocation5 + $0x5]] }
  0xf9   : > { %756 = vrot.lane.b32.xlu1 %v751_v27, %s1283_s7  ;;  %769 = vrot.lane.b32.xlu0 %v765_v28, %s1284_s9  ;;  %s1032_s7 = sld [smem:[#allocation5 + $0xf]] }
  0xfb   : > { %v1563_v1 = vstv %s1004_s5 }
  0xfc   : > { %v374_v41 = vmul.f32 %v1563_v1, %v1431_v46  ;;  %v375_v7 = vmul.f32 %v1563_v1, %v1444_v52 }
  0xfd   : > { %771 = vrot.lane.b32.xlu1 %v766_v30, %s1284_s9  ;;  %784 = vrot.lane.b32.xlu0 %v780_v31, %s1285_s11  ;;  %s897_s9 = sshll.u32 %s1631_s8, 4  ;;  %s1697_s9 = int_to_ptr.vmem [resolvable:$true] %s897_s9 }
  0xfe   : > { %s1192_s18 = scalar_lea.vmem %s1697_s9, 1024  ;;  %p1199_p1 = scmp.lt.s32.totalorder %s1697_s9, %s1197_s27 }
  0xff   : > { %p1193_p8 = scmp.ne.s32.totalorder %s1697_s9, %s1192_s18  ;;  %p1200_p3 = scmp.lt.s32.totalorder %s1198_s28, %s1192_s18 }
 0x101   : > { %786 = vrot.lane.b32.xlu1 %v781_v32, %s1285_s11  ;;  %p1194_p12 = pnand %p1193_p8, %p1358_p9  ;;  %p1201_p5 = por %p1200_p3, %p1199_p1 }
 0x103   : > { %p1195_p0 = pneg %p1194_p12 }
 0x105   : > { %p1202_p6 = pnand %p1201_p5, %p1195_p0 }
 0x133   : > { %v206_v33 = vpop.permute.xlu0 %205 }
 0x134   : > { %v211_v42 = vadd.f32 %v206_v33, %v194_v40 }
 0x137   : > { %v208_v35 = vpop.permute.xlu1 %207  ;;  %v221_v38 = vpop.permute.xlu0 %220 }
 0x138   : > { %v226_v48 = vadd.f32 %v221_v38, %v211_v42  ;;  %v212_v50 = vadd.f32 %v208_v35, %v195_v47 }
 0x13b   : > { %v223_v43 = vpop.permute.xlu1 %222  ;;  %v236_v45 = vpop.permute.xlu0 %235 }
 0x13c   : > { %v241_v53 = vadd.f32 %v236_v45, %v226_v48  ;;  %v227_v56 = vadd.f32 %v223_v43, %v212_v50 }
 0x13f   : > { %v238_v54 = vpop.permute.xlu1 %237  ;;  %v251_v55 = vpop.permute.xlu0 %250 }
 0x140   : > { %v256_v58 = vadd.f32 %v251_v55, %v241_v53  ;;  %v242_v60 = vadd.f32 %v238_v54, %v227_v56 }
 0x142   : > { %258 = vst.msk [vmem:[#allocation3 + $0x2] sm:$0xff] %vm164_vm2, %v256_v58 }
 0x143   : > { %v253_v61 = vpop.permute.xlu1 %252  ;;  %v386_v63 = vpop.permute.xlu0 %385 }
 0x144   : > { %v257_v37 = vadd.f32 %v253_v61, %v242_v60  ;;  %v391_v6 = vadd.f32 %v386_v63, %v374_v41 }
 0x146   : > { %259 = vst.msk [vmem:[#allocation3 + $0xa] sm:$0xff] %vm164_vm2, %v257_v37 }
 0x147   : > { %v388_v2 = vpop.permute.xlu1 %387  ;;  %v401_v5 = vpop.permute.xlu0 %400 }
 0x148   : > { %v392_v11 = vadd.f32 %v388_v2, %v375_v7  ;;  %v406_v13 = vadd.f32 %v401_v5, %v391_v6 }
 0x149   : > { %v260_v9 = vld [vmem:[#allocation3] sm:$0xff] }
 0x14a   : > { %v271_v10 = vmul.f32 %v260_v9, %v1405_v36  ;;  %v289_v19 = vmul.f32 %v260_v9, %v1412_v39  ;;  %v265_v23 = vmul.f32 %v260_v9, %v193_v34  ;;  %v307_v52 = vmul.f32 %v260_v9, %v1427_v44 }
 0x14b   : > { %v403_v14 = vpop.permute.xlu1 %402  ;;  %v416_v18 = vpop.permute.xlu0 %415  ;;  %v325_v28 = vmul.f32 %v260_v9, %v1438_v49 }
 0x14c   : > { %v407_v24 = vadd.f32 %v403_v14, %v392_v11  ;;  %v421_v25 = vadd.f32 %v416_v18, %v406_v13  ;;  %v278_v32 = vrot.slane %v271_v10, 1  ;;  %v296_v42 = vrot.slane %v289_v19, 2 }
 0x14d   : > { %v261_v46 = vld [vmem:[#allocation3 + $0x8] sm:$0xff]  ;;  %v262_v27 = vld [vmem:[#allocation3 + $0x10] sm:$0xf]  ;;  %v314_v2 = vrot.slane %v307_v52, 3  ;;  %v332_v18 = vrot.slane %v325_v28, 4  ;;  %v551_v52 = vmul.f32 %v1572_v20, %v1455_v57  ;;  %v552_v28 = vmul.f32 %v1572_v20, %v1466_v62 }
 0x14e   : > { %v272_v30 = vmul.f32 %v261_v46, %v1405_v36  ;;  %v273_v31 = vmul.f32 %v262_v27, %v1405_v36  ;;  %v290_v33 = vmul.f32 %v261_v46, %v1412_v39  ;;  %v291_v40 = vmul.f32 %v262_v27, %v1412_v39 }
 0x14f   : > { %v418_v35 = vpop.permute.xlu1 %417  ;;  %v431_v38 = vpop.permute.xlu0 %430  ;;  %v308_v43 = vmul.f32 %v261_v46, %v1427_v44  ;;  %v309_v45 = vmul.f32 %v262_v27, %v1427_v44  ;;  %v326_v53 = vmul.f32 %v261_v46, %v1438_v49  ;;  %v266_v54 = vmul.f32 %v261_v46, %v193_v34 }
 0x150   : > { %v436_v47 = vadd.f32 %v431_v38, %v421_v25  ;;  %v279_v48 = vrot.slane %v272_v30, 1  ;;  %v281_v50 = vrot.slane %v273_v31, 1  ;;  %v297_v55 = vrot.slane %v290_v33, 2 }
 0x151   : > { %v299_v36 = vrot.slane %v291_v40, 2  ;;  %v315_v56 = vrot.slane %v308_v43, 3  ;;  %v317_v60 = vrot.slane %v309_v45, 3  ;;  %v327_v61 = vmul.f32 %v262_v27, %v1438_v49 }
 0x152   : > { %438 = vst.msk [vmem:[#allocation3 + $0x2] sm:$0xff] %vm164_vm2, %v436_v47  ;;  %v280_v58 = vsel %vm277_vm4, %v278_v32, %v279_v48  ;;  %v282_v39 = vsel %vm277_vm4, %v279_v48, %v281_v50  ;;  %v422_v63 = vadd.f32 %v418_v35, %v407_v24  ;;  %v298_v34 = vsel %vm295_vm5, %v296_v42, %v297_v55 }
 0x153   : > { %v433_v44 = vpop.permute.xlu1 %432  ;;  %v285_v37 = vadd.f32 %v280_v58, %v265_v23  ;;  %v286_v41 = vadd.f32 %v282_v39, %v266_v54  ;;  %v563_v5 = vpop.permute.xlu0 %562  ;;  %v300_v6 = vsel %vm295_vm5, %v297_v55, %v299_v36  ;;  %v333_v7 = vrot.slane %v326_v53, 4 }
 0x154   : > { %v335_v9 = vrot.slane %v327_v61, 4  ;;  %v437_v13 = vadd.f32 %v433_v44, %v422_v63  ;;  %v316_v14 = vsel %vm313_vm6, %v314_v2, %v315_v56  ;;  %v318_v49 = vsel %vm313_vm6, %v315_v56, %v317_v60 }
 0x155   : > { %v303_v10 = vadd.f32 %v298_v34, %v285_v37  ;;  %v304_v11 = vadd.f32 %v300_v6, %v286_v41  ;;  %v334_v25 = vsel %vm331_vm7, %v332_v18, %v333_v7  ;;  %v568_v33 = vadd.f32 %v563_v5, %v551_v52 }
 0x156   : > { %439 = vst.msk [vmem:[#allocation3 + $0xa] sm:$0xff] %vm164_vm2, %v437_v13  ;;  %v336_v27 = vsel %vm331_vm7, %v333_v7, %v335_v9  ;;  %v1601_v50 = vstv %s1032_s7 }
 0x157   : > { %v321_v19 = vadd.f32 %v316_v14, %v303_v10  ;;  %v322_v23 = vadd.f32 %v318_v49, %v304_v11  ;;  %v565_v46 = vpop.permute.xlu1 %564  ;;  %v578_v24 = vpop.permute.xlu0 %577 }
 0x158   : > { %v569_v45 = vadd.f32 %v565_v46, %v552_v28  ;;  %v583_v47 = vadd.f32 %v578_v24, %v568_v33 }
 0x159   : > { %v339_v30 = vadd.f32 %v334_v25, %v321_v19  ;;  %v340_v31 = vadd.f32 %v336_v27, %v322_v23  ;;  %v440_v32 = vld [vmem:[#allocation3] sm:$0xff] }
 0x15a   : > { %v451_v43 = vmul.f32 %v440_v32, %v1442_v51  ;;  %v445_v48 = vmul.f32 %v440_v32, %v1563_v1  ;;  %v468_v57 = vmul.f32 %v440_v32, %v1460_v59  ;;  %v485_v36 = vmul.f32 %v440_v32, %v1471_v0 }
 0x15b   : > { %v341_v35 = vadd.f32 1.1920929e-07, %v339_v30  ;;  %v342_v38 = vadd.f32 1.1920929e-07, %v340_v31  ;;  %v580_v40 = vpop.permute.xlu1 %579  ;;  %v593_v42 = vpop.permute.xlu0 %592  ;;  %v502_v46 = vmul.f32 %v440_v32, %v1479_v3 }
 0x15c   : > { %v584_v54 = vadd.f32 %v580_v40, %v569_v45  ;;  %v598_v55 = vadd.f32 %v593_v42, %v583_v47  ;;  %v457_v61 = vrot.slane %v451_v43, 1  ;;  %v474_v23 = vrot.slane %v468_v57, 2 }
 0x15d   : > { %1140 = vlog2.f32 %v341_v35  ;;  %v441_v53 = vld [vmem:[#allocation3 + $0x8] sm:$0xff]  ;;  %v442_v62 = vld [vmem:[#allocation3 + $0x10] sm:$0xf]  ;;  %v491_v31 = vrot.slane %v485_v36, 3  ;;  %v508_v42 = vrot.slane %v502_v46, 4  ;;  %v728_v43 = vmul.f32 %v1601_v50, %v1515_v16 }
 0x15e   : > { %1142 = vlog2.f32 %v342_v38  ;;  %v452_v39 = vmul.f32 %v441_v53, %v1442_v51  ;;  %v453_v60 = vmul.f32 %v442_v62, %v1442_v51  ;;  %v469_v63 = vmul.f32 %v441_v53, %v1460_v59 }
 0x15f   : > { %v595_v56 = vpop.permute.xlu1 %594  ;;  %v608_v58 = vpop.permute.xlu0 %607  ;;  %v446_v44 = vmul.f32 %v441_v53, %v1563_v1  ;;  %v470_v41 = vmul.f32 %v442_v62, %v1460_v59  ;;  %v486_v2 = vmul.f32 %v441_v53, %v1471_v0  ;;  %v487_v7 = vmul.f32 %v442_v62, %v1471_v0 }
 0x160   : > { %v613_v37 = vadd.f32 %v608_v58, %v598_v55  ;;  %v458_v5 = vrot.slane %v452_v39, 1  ;;  %v460_v34 = vrot.slane %v453_v60, 1  ;;  %v475_v6 = vrot.slane %v469_v63, 2 }
 0x161   : > { %v599_v9 = vadd.f32 %v595_v56, %v584_v54  ;;  %v477_v10 = vrot.slane %v470_v41, 2  ;;  %v503_v51 = vmul.f32 %v441_v53, %v1479_v3  ;;  %v504_v11 = vmul.f32 %v442_v62, %v1479_v3 }
 0x162   : > { %615 = vst.msk [vmem:[#allocation3 + $0x2] sm:$0xff] %vm164_vm2, %v613_v37  ;;  %v459_v1 = vsel %vm277_vm4, %v457_v61, %v458_v5  ;;  %v461_v59 = vsel %vm277_vm4, %v458_v5, %v460_v34  ;;  %v492_v14 = vrot.slane %v486_v2, 3  ;;  %v494_v49 = vrot.slane %v487_v7, 3 }
 0x163   : > { %v610_v13 = vpop.permute.xlu1 %609  ;;  %v740_v18 = vpop.permute.xlu0 %739  ;;  %v465_v19 = vadd.f32 %v461_v59, %v446_v44  ;;  %v478_v0 = vsel %vm295_vm5, %v475_v6, %v477_v10  ;;  %v509_v24 = vrot.slane %v503_v51, 4  ;;  %v511_v25 = vrot.slane %v504_v11, 4 }
 0x164   : > { %v614_v27 = vadd.f32 %v610_v13, %v599_v9  ;;  %v464_v52 = vadd.f32 %v459_v1, %v445_v48  ;;  %v476_v33 = vsel %vm295_vm5, %v474_v23, %v475_v6  ;;  %v495_v28 = vsel %vm313_vm6, %v492_v14, %v494_v49 }
 0x165   : > { %v482_v30 = vadd.f32 %v478_v0, %v465_v19  ;;  %v493_v3 = vsel %vm313_vm6, %v491_v31, %v492_v14  ;;  %v512_v48 = vsel %vm331_vm7, %v509_v24, %v511_v25  ;;  %v745_v53 = vadd.f32 %v740_v18, %v728_v43 }
 0x166   : > { %616 = vst.msk [vmem:[#allocation3 + $0xa] sm:$0xff] %vm164_vm2, %v614_v27  ;;  %v481_v40 = vadd.f32 %v476_v33, %v464_v52  ;;  %v729_v54 = vmul.f32 %v1601_v50, %v1527_v21  ;;  %v510_v55 = vsel %vm331_vm7, %v508_v42, %v509_v24 }
 0x167   : > { %v742_v35 = vpop.permute.xlu1 %741  ;;  %v755_v38 = vpop.permute.xlu0 %754  ;;  %v499_v32 = vadd.f32 %v495_v28, %v482_v30 }
 0x168   : > { %v498_v47 = vadd.f32 %v493_v3, %v481_v40  ;;  %v746_v63 = vadd.f32 %v742_v35, %v729_v54  ;;  %v760_v44 = vadd.f32 %v755_v38, %v745_v53 }
 0x169   : > { %v617_v45 = vld [vmem:[#allocation3] sm:$0xff]  ;;  %v516_v62 = vadd.f32 %v512_v48, %v499_v32 }
 0x16a   : > { %v1141_v57 = vpop.eup %1140  ;;  %v515_v39 = vadd.f32 %v510_v55, %v498_v47  ;;  %v628_v60 = vmul.f32 %v617_v45, %v1483_v4  ;;  %v622_v41 = vmul.f32 %v617_v45, %v1572_v20  ;;  %v645_v2 = vmul.f32 %v617_v45, %v1493_v8 }
 0x16b   : > { %v1143_v36 = vpop.eup %1142  ;;  %v757_v56 = vpop.permute.xlu1 %756  ;;  %v344_v16 = vmul.f32 0.6931472, %v1141_v57  ;;  %v518_v37 = vadd.f32 1.1920929e-07, %v516_v62  ;;  %v662_v9 = vmul.f32 %v617_v45, %v1503_v12 }
 0x16c   : > { %v770_v58 = vpop.permute.xlu0 %769  ;;  %v346_v61 = vmul.f32 0.6931472, %v1143_v36  ;;  %v517_v21 = vadd.f32 1.1920929e-07, %v515_v39  ;;  %v761_v6 = vadd.f32 %v757_v56, %v746_v63  ;;  %v634_v1 = vrot.slane %v628_v60, 1 }
 0x16d   : > { %347 = vst.msk [vmem:[%s1631_s8] sm:$0xff] %vm164_vm2, %v344_v16  ;;  %v618_v5 = vld [vmem:[#allocation3 + $0x8] sm:$0xff]  ;;  %v619_v34 = vld [vmem:[#allocation3 + $0x10] sm:$0xf]  ;;  %v775_v7 = vadd.f32 %v770_v58, %v760_v44  ;;  %1144 = vlog2.f32 %v518_v37  ;;  %v668_v43 = vrot.slane %v662_v9, 3 }
 0x16e   : > { %348 = vst.msk [vmem:[%s1631_s8 + $0x8] sm:$0xff] %vm164_vm2, %v346_v61  ;;  %v630_v10 = vmul.f32 %v619_v34, %v1483_v4  ;;  %v647_v51 = vmul.f32 %v619_v34, %v1493_v8  ;;  %1146 = vlog2.f32 %v517_v21  ;;  %v629_v49 = vmul.f32 %v618_v5, %v1483_v4 }
 0x16f   : > { %v772_v11 = vpop.permute.xlu1 %771  ;;  %v646_v18 = vmul.f32 %v618_v5, %v1493_v8  ;;  %v663_v0 = vmul.f32 %v618_v5, %v1503_v12  ;;  %v664_v46 = vmul.f32 %v619_v34, %v1503_v12  ;;  %v680_v27 = vmul.f32 %v618_v5, %v1511_v15 }
 0x170   : > { %v785_v13 = vpop.permute.xlu0 %784  ;;  %v776_v59 = vadd.f32 %v772_v11, %v761_v6  ;;  %v637_v19 = vrot.slane %v630_v10, 1  ;;  %v654_v23 = vrot.slane %v647_v51, 2  ;;  %v635_v24 = vrot.slane %v629_v49, 1 }
 0x171   : > { %v790_v14 = vadd.f32 %v785_v13, %v775_v7  ;;  %v652_v25 = vrot.slane %v646_v18, 2  ;;  %v681_v52 = vmul.f32 %v619_v34, %v1511_v15  ;;  %v623_v31 = vmul.f32 %v618_v5, %v1572_v20 }
 0x172   : > { %v651_v4 = vrot.slane %v645_v2, 2  ;;  %v669_v33 = vrot.slane %v663_v0, 3  ;;  %v679_v8 = vmul.f32 %v617_v45, %v1511_v15  ;;  %v636_v35 = vsel %vm277_vm4, %v634_v1, %v635_v24 }
 0x173   : > { %792 = vst.msk [vmem:[#allocation3 + $0x2] sm:$0xff] %vm164_vm2, %v790_v14  ;;  %v787_v30 = vpop.permute.xlu1 %786  ;;  %v638_v12 = vsel %vm277_vm4, %v635_v24, %v637_v19  ;;  %v671_v38 = vrot.slane %v664_v46, 3  ;;  %v641_v40 = vadd.f32 %v636_v35, %v622_v41  ;;  %v655_v32 = vsel %vm295_vm5, %v652_v25, %v654_v23 }
 0x174   : > { %v791_v28 = vadd.f32 %v787_v30, %v776_v59  ;;  %v642_v42 = vadd.f32 %v638_v12, %v623_v31  ;;  %v653_v3 = vsel %vm295_vm5, %v651_v4, %v652_v25  ;;  %v686_v20 = vrot.slane %v680_v27, 4 }
 0x175   : > { %v688_v47 = vrot.slane %v681_v52, 4  ;;  %v658_v48 = vadd.f32 %v653_v3, %v641_v40  ;;  %v670_v15 = vsel %vm313_vm6, %v668_v43, %v669_v33  ;;  %v672_v45 = vsel %vm313_vm6, %v669_v33, %v671_v38 }
 0x176   : > { %793 = vst.msk [vmem:[#allocation3 + $0xa] sm:$0xff] %vm164_vm2, %v791_v28  ;;  %v659_v57 = vadd.f32 %v655_v32, %v642_v42  ;;  %v685_v53 = vrot.slane %v679_v8, 4 }
 0x177   : > { %v675_v54 = vadd.f32 %v670_v15, %v658_v48  ;;  %v689_v56 = vsel %vm331_vm7, %v686_v20, %v688_v47 }
 0x178   : > { %v676_v55 = vadd.f32 %v672_v45, %v659_v57  ;;  %v687_v36 = vsel %vm331_vm7, %v685_v53, %v686_v20 }
 0x179   : > { %v692_v16 = vadd.f32 %v687_v36, %v675_v54 }
 0x17a   : > { %v794_v62 = vld [vmem:[#allocation3] sm:$0xff]  ;;  %v1145_v58 = vpop.eup %1144  ;;  %v693_v39 = vadd.f32 %v689_v56, %v676_v55 }
 0x17b   : > { %v1147_v60 = vpop.eup %1146  ;;  %v522_v61 = vmul.f32 0.6931472, %v1145_v58  ;;  %v799_v63 = vmul.f32 %v794_v62, %v1601_v50  ;;  %v805_v44 = vmul.f32 %v794_v62, %v1517_v17  ;;  %v822_v37 = vmul.f32 %v794_v62, %v1529_v22 }
 0x17c   : > { %v520_v21 = vmul.f32 0.6931472, %v1147_v60  ;;  %v694_v41 = vadd.f32 1.1920929e-07, %v692_v16  ;;  %v695_v2 = vadd.f32 1.1920929e-07, %v693_v39  ;;  %v839_v34 = vmul.f32 %v794_v62, %v1539_v26 }
 0x17d   : > { %v795_v5 = vld [vmem:[#allocation3 + $0x8] sm:$0xff]  ;;  %1015 = vst.msk [vmem:[%s1631_s8 + $0x18] sm:$0xff] %vm164_vm2, %v522_v61  ;;  %v796_v6 = vld [vmem:[#allocation3 + $0x10] sm:$0xf]  ;;  %v856_v51 = vmul.f32 %v794_v62, %v1547_v29  ;;  %v811_v59 = vrot.slane %v805_v44, 1  ;;  %v828_v19 = vrot.slane %v822_v37, 2 }
 0x17e   : > { %v806_v7 = vmul.f32 %v795_v5, %v1517_v17  ;;  %v823_v9 = vmul.f32 %v795_v5, %v1529_v22  ;;  %v840_v10 = vmul.f32 %v795_v5, %v1539_v26  ;;  %1014 = vst.msk [vmem:[%s1631_s8 + $0x10] sm:$0xff] %vm164_vm2, %v520_v21  ;;  %1148 = vlog2.f32 %v694_v41 }
 0x17f   : > { %v807_v11 = vmul.f32 %v796_v6, %v1517_v17  ;;  %v824_v13 = vmul.f32 %v796_v6, %v1529_v22  ;;  %v841_v1 = vmul.f32 %v796_v6, %v1539_v26  ;;  %1150 = vlog2.f32 %v695_v2 }
 0x180   : > { %v812_v14 = vrot.slane %v806_v7, 1  ;;  %v829_v49 = vrot.slane %v823_v9, 2  ;;  %v857_v0 = vmul.f32 %v795_v5, %v1547_v29  ;;  %v800_v46 = vmul.f32 %v795_v5, %v1601_v50 }
 0x181   : > { %v814_v18 = vrot.slane %v807_v11, 1  ;;  %v831_v23 = vrot.slane %v824_v13, 2  ;;  %v846_v25 = vrot.slane %v840_v10, 3  ;;  %v858_v17 = vmul.f32 %v796_v6, %v1547_v29 }
 0x182   : > { %v813_v24 = vsel %vm277_vm4, %v811_v59, %v812_v14  ;;  %v848_v26 = vrot.slane %v841_v1, 3  ;;  %v830_v30 = vsel %vm295_vm5, %v828_v19, %v829_v49  ;;  %v845_v31 = vrot.slane %v839_v34, 3 }
 0x183   : > { %v815_v22 = vsel %vm277_vm4, %v812_v14, %v814_v18  ;;  %v818_v27 = vadd.f32 %v813_v24, %v799_v63  ;;  %v863_v4 = vrot.slane %v857_v0, 4  ;;  %v832_v33 = vsel %vm295_vm5, %v829_v49, %v831_v23 }
 0x184   : > { %v819_v52 = vadd.f32 %v815_v22, %v800_v46  ;;  %v865_v28 = vrot.slane %v858_v17, 4  ;;  %v847_v50 = vsel %vm313_vm6, %v845_v31, %v846_v25  ;;  %v862_v12 = vrot.slane %v856_v51, 4 }
 0x185   : > { %v835_v8 = vadd.f32 %v830_v30, %v818_v27  ;;  %v849_v29 = vsel %vm313_vm6, %v846_v25, %v848_v26 }
 0x186   : > { %v836_v35 = vadd.f32 %v832_v33, %v819_v52  ;;  %v864_v42 = vsel %vm331_vm7, %v862_v12, %v863_v4  ;;  %v866_v43 = vsel %vm331_vm7, %v863_v4, %v865_v28 }
 0x187   : > { %v852_v38 = vadd.f32 %v847_v50, %v835_v8 }
 0x188   : > { %v853_v40 = vadd.f32 %v849_v29, %v836_v35 }
 0x189   : > { %v869_v3 = vadd.f32 %v864_v42, %v852_v38 }
 0x18a   : > { %v870_v32 = vadd.f32 %v866_v43, %v853_v40 }
 0x18b   : > { %v871_v20 = vadd.f32 1.1920929e-07, %v869_v3  ;;  %v1149_v47 = vpop.eup %1148 }
 0x18c   : > { %v872_v48 = vadd.f32 1.1920929e-07, %v870_v32  ;;  %v1151_v57 = vpop.eup %1150  ;;  %v697_v15 = vmul.f32 0.6931472, %v1149_v47 }
 0x18d   : > { %1152 = vlog2.f32 %v871_v20  ;;  %v699_v45 = vmul.f32 0.6931472, %v1151_v57 }
 0x18e   : > { %1154 = vlog2.f32 %v872_v48  ;;  %1028 = vst.msk [vmem:[%s1631_s8 + $0x20] sm:$0xff] %vm164_vm2, %v697_v15 }
 0x18f   : > { %1029 = vst.msk [vmem:[%s1631_s8 + $0x28] sm:$0xff] %vm164_vm2, %v699_v45 }
 0x19a   : > { %v1153_v53 = vpop.eup %1152 }
 0x19b   : > { %v1155_v54 = vpop.eup %1154  ;;  %v874_v55 = vmul.f32 0.6931472, %v1153_v53 }
 0x19c   : > { %v876_v62 = vmul.f32 0.6931472, %v1155_v54 }
 0x19d   : > { %1042 = vst.msk [vmem:[%s1631_s8 + $0x30] sm:$0xff] %vm164_vm2, %v874_v55 }
 0x19e   : > { %1043 = vst.msk [vmem:[%s1631_s8 + $0x38] sm:$0xff] %vm164_vm2, %v876_v62 }
 0x19f   : > { %1205 = shalt.err (!%p1202_p6)
}
 0x1a0   : > { %s1206_s23 = scalar_lea.hbm %s1695_s0, 1024  ;;  %s1210_s3 = scalar_lea.hbm %s1751_s2, 2048 }
 0x1a1   : > { %p1207_p7 = scmp.ne.s32.totalorder %s1695_s0, %s1206_s23  ;;  %p1211_p13 = scmp.lt.s32.totalorder %s1695_s0, %s1751_s2 }
 0x1a2   : > { %p1212_p2 = scmp.lt.s32.totalorder %s1210_s3, %s1206_s23 }
 0x1a3   : > { %p1208_p10 = pnand %p1207_p7, %p1358_p9 }
 0x1a4   : > { %p1213_p8 = por %p1212_p2, %p1211_p13 }
 0x1a5   : > { %p1209_p4 = pneg %p1208_p10 }
 0x1a7   : > { %p1214_p12 = pnand %p1213_p8, %p1209_p4 }
 0x1a9   : > { %1217 = shalt.err (!%p1214_p12)
}
 0x1aa   : > { %s1287_s6 = smov 128   ;;  %s1288_s7 = smov 8  }
 0x1ab   : > { %1053 = dma.vmem_to_hbm [thread:$0]  (%p1358_p9), %s1697_s9, 1024, %s1695_s0, %s881_s15, %s1287_s6, %s1287_s6, %s1288_s7  }
 0x1ac PF: > { %s912_s8 = sand.u32 1, %s1254_s12   ;;  %p1757_p0 = scmp.ge.s32.totalorder %s1274_s17, 2 }
 0x1ad   : > { %s913_s22 = scalar_lea.sflag [#allocation8], %s912_s8 }
 0x1ae   : > { %p1060_p1 = pnand %p1757_p0, %p1365_p11 }
 0x1b0   : > { %p1061_p3 = pneg %p1060_p1 }
 0x1b2   : > { %1249 = dma.done.wait (%p1061_p3), %s913_s22, 1024  }
 0x1b3   : > { %1251 = vsyncadd (%p1061_p3), %s913_s22, 4294966272  ;;  %s22_s17 = sadd.s32 1, %s1274_s17   ;;  %s1758_s12 = smov %s1258_s13 }
 0x1b4   : > { %p19_p5 = scmp.ge.s32.totalorder %s22_s17, 4   ;;  %s1759_s13 = smov %s1262_s14 }
 0x1b5   : > { %s1760_s14 = smov %s1363_s25  ;;  %s1761_s15 = smov %s1270_s16 }
 0x1b6   : > { %s1762_s16 = smov %s1764_s19  ;;  %21 = sbr.rel (!%p19_p5) target bundleno = 11 (0xb), region = 75 }
 0x1bb   :  { %918 = vsyncpa [#allocation7], 1 }
 0x1bc   :  { %920 = vsyncpa [#allocation7 + $0x1], 1 }
 0x1bd   :  { %921 = vsyncpa [#allocation8], 1 }
 0x1be   :  { %923 = vsyncpa [#allocation8 + $0x1], 1 }

</bundles_post_ra>
